<compile_context>
chip_gen: v7x
topology: tpu7x:2x2x1
jax: 0.10.0
libtpu: 0.0.40
codegen_flags: <defaults>
</compile_context>

<pallas_src>
import math
from functools import partial

import jax
import jax.numpy as jnp
import numpy as np
from jax import lax
from jax.experimental import pallas as pl
from jax.experimental.pallas import tpu as pltpu


def _round_up(x, m):
    return ((x + m - 1) // m) * m


def _choose_tile(dim, candidates, align):
    """Largest candidate <= dim, else the aligned round-up of dim itself."""
    for c in candidates:
        if dim >= c:
            return c
    return _round_up(dim, align)


# ----------------------------- Pallas kernels -----------------------------

def _linear_kernel(x_ref, w_ref, b_ref, o_ref, acc_ref, *, activation):
    """One (tm, tn) output tile; K is the trailing 'arbitrary' grid axis."""
    @pl.when(pl.program_id(2) == 0)
    def _init():
        acc_ref[...] = jnp.zeros_like(acc_ref)

    x = x_ref[...]
    if x.dtype != jnp.bfloat16:          # activations are already bf16; no-op then
        x = x.astype(jnp.bfloat16)
    acc_ref[...] += jnp.dot(x, w_ref[...], preferred_element_type=jnp.float32)

    @pl.when(pl.program_id(2) == pl.num_programs(2) - 1)
    def _finalize():
        out = acc_ref[...] + b_ref[...]
        if activation == "relu":
            out = jnp.maximum(out, 0.0)
        o_ref[...] = out.astype(o_ref.dtype)   # bf16 stores (half the vst traffic)


def linear(x2d, w, b, activation=None, out_dtype=jnp.bfloat16):
    """x2d: [M, K] (bf16/f32), w: [K, N] bf16, b: [N] f32 -> [M, N] out_dtype.

    Tiled over (M, N, K).  M/N are 'parallel' (megacore-shardable), K is the
    trailing 'arbitrary' reduction axis with an f32 VMEM accumulator.  N is
    padded to a multiple of 128 so output stores are lane-dense.
    """
    M, K = x2d.shape
    N = w.shape[1]

    tm = _choose_tile(M, (512, 256, 128), 8)
    tn = _choose_tile(N, (512, 256, 128), 128)
    tk = _choose_tile(K, (512, 256, 128), 128)

    Mp, Np, Kp = _round_up(M, tm), _round_up(N, tn), _round_up(K, tk)

    xb = x2d
    if (Mp, Kp) != (M, K):
        xb = jnp.pad(xb, ((0, Mp - M), (0, Kp - K)))
    wb = w.astype(jnp.bfloat16)
    if (Kp, Np) != (K, N):
        wb = jnp.pad(wb, ((0, Kp - K), (0, Np - N)))
    bp = b if Np == N else jnp.pad(b, (0, Np - N))

    grid = (Mp // tm, Np // tn, Kp // tk)

    out = pl.pallas_call(
        partial(_linear_kernel, activation=activation),
        grid_spec=pltpu.PrefetchScalarGridSpec(
            num_scalar_prefetch=0,
            grid=grid,
            in_specs=[
                pl.BlockSpec((tm, tk), lambda i, j, k: (i, k)),
                pl.BlockSpec((tk, tn), lambda i, j, k: (k, j)),
                pl.BlockSpec((1, tn), lambda i, j, k: (0, j)),
            ],
            out_specs=pl.BlockSpec((tm, tn), lambda i, j, k: (i, j)),
            scratch_shapes=[pltpu.VMEM((tm, tn), jnp.float32)],
        ),
        out_shape=jax.ShapeDtypeStruct((Mp, Np), out_dtype),
        compiler_params=pltpu.CompilerParams(
            dimension_semantics=("parallel", "parallel", "arbitrary"),
            vmem_limit_bytes=32 * 1024 * 1024,   # safe on v5e/v6e/v7x
        ),
    )(xb, wb, bp.reshape(1, Np))

    if (Mp, Np) != (M, N):
        out = out[:M, :N]
    return out


def _add_layernorm_kernel(x_ref, r_ref, g_ref, b_ref, o_ref):
    """Fused residual add + LayerNorm.  bf16 I/O, f32 math in-register."""
    x = x_ref[...].astype(jnp.float32) + r_ref[...].astype(jnp.float32)
    mu = jnp.mean(x, axis=-1, keepdims=True)
    var = jnp.mean(jnp.square(x - mu), axis=-1, keepdims=True)
    y = (x - mu) * lax.rsqrt(var + 1e-5) * g_ref[...] + b_ref[...]
    o_ref[...] = y.astype(o_ref.dtype)


def add_layer_norm(x2d, res2d, gamma, beta):
    """LayerNorm(x2d + res2d) over the last dim.  x2d/res2d: [M, D] bf16."""
    M, D = x2d.shape
    tm = _choose_tile(M, (512, 256), 8)
    Mp = _round_up(M, tm)
    if Mp != M:
        x2d = jnp.pad(x2d, ((0, Mp - M), (0, 0)))
        res2d = jnp.pad(res2d, ((0, Mp - M), (0, 0)))

    out = pl.pallas_call(
        _add_layernorm_kernel,
        grid=(Mp // tm,),
        in_specs=[
            pl.BlockSpec((tm, D), lambda i: (i, 0)),
            pl.BlockSpec((tm, D), lambda i: (i, 0)),
            pl.BlockSpec((1, D), lambda i: (0, 0)),
            pl.BlockSpec((1, D), lambda i: (0, 0)),
        ],
        out_specs=pl.BlockSpec((tm, D), lambda i: (i, 0)),
        out_shape=jax.ShapeDtypeStruct((Mp, D), jnp.bfloat16),
        compiler_params=pltpu.CompilerParams(
            dimension_semantics=("parallel",)),
    )(x2d, res2d, gamma.reshape(1, D), beta.reshape(1, D))

    return out[:M] if Mp != M else out


def _attention_kernel(q_ref, k_ref, v_ref, kvalid_ref, o_ref, *, causal, scale):
    """All heads for one batch element, batched through the MXU.

    q/k/v are head-major [H, S, dk] bf16; the pad(+causal) mask is rebuilt
    in-kernel from a tiny per-batch key-validity vector (no O(S^2) HBM mask).
    """
    q = q_ref[0]                       # [H, Sq, dk] bf16
    k = k_ref[0]                       # [H, Sk, dk] bf16
    v = v_ref[0]                       # [H, Sk, dk] bf16
    Sq, Sk = q.shape[1], k.shape[1]

    # QK^T for all heads in one batched contraction (no explicit transpose).
    s = lax.dot_general(q, k, (((2,), (2,)), ((0,), (0,))),
                        preferred_element_type=jnp.float32) * scale   # [H,Sq,Sk]

    # Rebuild key-pad (+causal) mask in-kernel: a few VPU compares per tile.
    kmask = kvalid_ref[0] > 0                                         # [1, Sk]
    if causal:
        qi = lax.broadcasted_iota(jnp.int32, (Sq, Sk), 0)
        ki = lax.broadcasted_iota(jnp.int32, (Sq, Sk), 1)
        kmask = kmask & (ki <= qi)                                    # [Sq, Sk]
    s = jnp.where(kmask[None], s, jnp.float32(-1e9))

    # Softmax in f32; reciprocal on the EUP.
    s = s - jnp.max(s, axis=-1, keepdims=True)
    p = jnp.exp(s)
    p = p * pl.reciprocal(jnp.sum(p, axis=-1, keepdims=True), approx=True)

    # PV for all heads in one batched contraction (bf16 MXU operands).
    ctx = lax.dot_general(p.astype(jnp.bfloat16), v,
                          (((2,), (1,)), ((0,), (0,))),
                          preferred_element_type=jnp.float32)         # [H,Sq,dk]
    o_ref[0] = ctx.astype(o_ref.dtype)


def scaled_dot_product_attention(q, k, v, key_valid, n_heads, causal):
    """q: [B,Sq,D], k/v: [B,Sk,D] bf16 (heads packed in lanes),
    key_valid: [B,Sk] int (1 = real token, 0 = <pad>).  Returns [B,Sq,D] bf16."""
    B, Sq, D = q.shape
    Sk = k.shape[1]
    dk = D // n_heads

    # Head-major layout produced ONCE in the wrapper so the kernel can batch
    # every head through a single MXU pass.
    qh = q.reshape(B, Sq, n_heads, dk).transpose(0, 2, 1, 3)
    kh = k.reshape(B, Sk, n_heads, dk).transpose(0, 2, 1, 3)
    vh = v.reshape(B, Sk, n_heads, dk).transpose(0, 2, 1, 3)
    kv = key_valid.reshape(B, 1, Sk).astype(jnp.int32)

    out = pl.pallas_call(
        partial(_attention_kernel, causal=causal, scale=1.0 / math.sqrt(dk)),
        grid=(B,),
        in_specs=[
            pl.BlockSpec((1, n_heads, Sq, dk), lambda b: (b, 0, 0, 0)),
            pl.BlockSpec((1, n_heads, Sk, dk), lambda b: (b, 0, 0, 0)),
            pl.BlockSpec((1, n_heads, Sk, dk), lambda b: (b, 0, 0, 0)),
            pl.BlockSpec((1, 1, Sk), lambda b: (b, 0, 0)),
        ],
        out_specs=pl.BlockSpec((1, n_heads, Sq, dk), lambda b: (b, 0, 0, 0)),
        out_shape=jax.ShapeDtypeStruct((B, n_heads, Sq, dk), jnp.bfloat16),
        compiler_params=pltpu.CompilerParams(
            dimension_semantics=("parallel",)),
    )(qh, kh, vh, kv)

    return out.transpose(0, 2, 1, 3).reshape(B, Sq, D)


# ----------------------------- Model (glue) --------------------------------

def sinusoidal_pe(seq_length, d_model):
    pos = np.arange(seq_length, dtype=np.float32)[:, None]
    i = np.arange(0, d_model, 2, dtype=np.float32)[None, :]
    angle = pos / np.power(10000.0, i / d_model)
    pe = np.zeros((seq_length, d_model), np.float32)
    pe[:, 0::2] = np.sin(angle)
    pe[:, 1::2] = np.cos(angle)
    return jnp.asarray(pe)


def init_linear(key, fan_in, fan_out):
    k1, k2 = jax.random.split(key)
    limit = 1.0 / math.sqrt(fan_in)
    w = jax.random.uniform(k1, (fan_in, fan_out), jnp.float32, -limit, limit)
    b = jax.random.uniform(k2, (fan_out,), jnp.float32, -limit, limit)
    return (w.astype(jnp.bfloat16), b)   # weights stored bf16 for the MXU


def init_mha(key, d_model, mode):
    """Pre-fuses Q|K|V (self-attn) or K|V (cross-attn) weights at init time so
    the forward pass never concatenates parameters."""
    ks = jax.random.split(key, 4)
    wq = init_linear(ks[0], d_model, d_model)
    wk = init_linear(ks[1], d_model, d_model)
    wv = init_linear(ks[2], d_model, d_model)
    wo = init_linear(ks[3], d_model, d_model)
    if mode == "self":
        return {
            "wqkv": (jnp.concatenate([wq[0], wk[0], wv[0]], axis=1),
                     jnp.concatenate([wq[1], wk[1], wv[1]], axis=0)),
            "wo": wo,
        }
    return {
        "wq": wq,
        "wkv": (jnp.concatenate([wk[0], wv[0]], axis=1),
                jnp.concatenate([wk[1], wv[1]], axis=0)),
        "wo": wo,
    }


def init_ln(d_model):
    return (jnp.ones((d_model,), jnp.float32), jnp.zeros((d_model,), jnp.float32))


def init_encoder_layer(key, d_model, d_hidden):
    ks = jax.random.split(key, 3)
    return {
        "attn": init_mha(ks[0], d_model, "self"),
        "ln1": init_ln(d_model),
        "ff1": init_linear(ks[1], d_model, d_hidden),
        "ff2": init_linear(ks[2], d_hidden, d_model),
        "ln2": init_ln(d_model),
    }


def init_decoder_layer(key, d_model, d_hidden):
    ks = jax.random.split(key, 4)
    return {
        "self_attn": init_mha(ks[0], d_model, "self"),
        "ln1": init_ln(d_model),
        "cross_attn": init_mha(ks[1], d_model, "cross"),
        "ln2": init_ln(d_model),
        "ff1": init_linear(ks[2], d_model, d_hidden),
        "ff2": init_linear(ks[3], d_hidden, d_model),
        "ln3": init_ln(d_model),
    }


def init_transformer(key, v_size_enc, v_size_dec, seq_length, d_model, d_hidden, n_layers):
    keys = jax.random.split(key, 3 + 2 * n_layers)
    return {
        "enc_emb": jax.random.normal(keys[0], (v_size_enc, d_model), jnp.float32),
        "dec_emb": jax.random.normal(keys[1], (v_size_dec, d_model), jnp.float32),
        "pe": sinusoidal_pe(seq_length, d_model),
        "enc_layers": [
            init_encoder_layer(keys[2 + i], d_model, d_hidden) for i in range(n_layers)
        ],
        "dec_layers": [
            init_decoder_layer(keys[2 + n_layers + i], d_model, d_hidden)
            for i in range(n_layers)
        ],
        "fc_out": init_linear(keys[2 + 2 * n_layers], d_model, v_size_dec),
    }


def self_attention(p, x, key_valid, n_heads, causal):
    B, S, D = x.shape
    qkv = linear(x.reshape(B * S, D), *p["wqkv"])          # fused [D,3D] projection
    q = qkv[:, 0 * D:1 * D].reshape(B, S, D)
    k = qkv[:, 1 * D:2 * D].reshape(B, S, D)
    v = qkv[:, 2 * D:3 * D].reshape(B, S, D)
    ctx = scaled_dot_product_attention(q, k, v, key_valid, n_heads, causal)
    return linear(ctx.reshape(B * S, D), *p["wo"]).reshape(B, S, D)


def cross_attention(p, q_in, kv_in, key_valid, n_heads):
    B, Sq, D = q_in.shape
    Sk = kv_in.shape[1]
    q = linear(q_in.reshape(B * Sq, D), *p["wq"]).reshape(B, Sq, D)
    kv = linear(kv_in.reshape(B * Sk, D), *p["wkv"])        # fused [D,2D] projection
    k = kv[:, 0 * D:1 * D].reshape(B, Sk, D)
    v = kv[:, 1 * D:2 * D].reshape(B, Sk, D)
    ctx = scaled_dot_product_attention(q, k, v, key_valid, n_heads, False)
    return linear(ctx.reshape(B * Sq, D), *p["wo"]).reshape(B, Sq, D)


def feed_forward(p, x2d):
    h = linear(x2d, *p["ff1"], activation="relu")   # bias + ReLU fused in-kernel
    return linear(h, *p["ff2"])


def encoder_layer(p, x, src_valid, n_heads):
    B, S, D = x.shape
    x2 = x.reshape(B * S, D)
    a = self_attention(p["attn"], x, src_valid, n_heads, causal=False)
    x2 = add_layer_norm(a.reshape(B * S, D), x2, *p["ln1"])   # residual fused
    h = feed_forward(p, x2)
    x2 = add_layer_norm(h, x2, *p["ln2"])
    return x2.reshape(B, S, D)


def decoder_layer(p, y, enc, trg_valid, src_valid, n_heads):
    B, S, D = y.shape
    y2 = y.reshape(B * S, D)
    a = self_attention(p["self_attn"], y, trg_valid, n_heads, causal=True)
    y2 = add_layer_norm(a.reshape(B * S, D), y2, *p["ln1"])
    c = cross_attention(p["cross_attn"], y2.reshape(B, S, D), enc, src_valid, n_heads)
    y2 = add_layer_norm(c.reshape(B * S, D), y2, *p["ln2"])
    h = feed_forward(p, y2)
    y2 = add_layer_norm(h, y2, *p["ln3"])
    return y2.reshape(B, S, D)


def transformer_forward(params, src, trg, *, n_heads, src_pad_idx, trg_pad_idx):
    # TODO(synk): dropout is identity (eval/inference semantics)
    # Only tiny key-validity vectors are passed; the pad(+causal) masks are
    # rebuilt inside the attention kernel (matches make_src_mask/make_trg_mask).
    src_valid = (src != src_pad_idx).astype(jnp.int32)   # [B, Ss]
    trg_valid = (trg != trg_pad_idx).astype(jnp.int32)   # [B, St]

    B, Ss = src.shape
    _, St = trg.shape

    # Encoder: token embedding + sinusoidal positional encoding (bf16 stream)
    x = (jnp.take(params["enc_emb"], src, axis=0)
         + params["pe"][:Ss][None, :, :]).astype(jnp.bfloat16)
    for lp in params["enc_layers"]:
        x = encoder_layer(lp, x, src_valid, n_heads)
    enc = x

    # Decoder
    y = (jnp.take(params["dec_emb"], trg, axis=0)
         + params["pe"][:St][None, :, :]).astype(jnp.bfloat16)
    for lp in params["dec_layers"]:
        y = decoder_layer(lp, y, enc, trg_valid, src_valid, n_heads)

    # Final projection to the decoder vocabulary (f32 logits, minimal 128-pad)
    D = y.shape[-1]
    v_dec = params["fc_out"][0].shape[1]
    out = linear(y.reshape(B * St, D), *params["fc_out"],
                 out_dtype=jnp.float32).reshape(B, St, v_dec)
    return out


# ----------------------------- Main -----------------------------------------

if __name__ == "__main__":
    # Small, forward-consistent configuration
    v_size_enc = 11
    v_size_dec = 13
    seq_length = 8
    d_model = 32
    n_heads = 4
    d_hidden = 64
    n_layers = 2
    src_pad_idx = 0
    trg_pad_idx = 0
    batch = 2

    root = jax.random.PRNGKey(0)
    k_params, k_src, k_trg = jax.random.split(root, 3)

    params = init_transformer(
        k_params, v_size_enc, v_size_dec, seq_length, d_model, d_hidden, n_layers
    )

    src = jax.random.randint(k_src, (batch, seq_length), 0, v_size_enc, dtype=jnp.int32)
    trg = jax.random.randint(k_trg, (batch, seq_length), 0, v_size_dec, dtype=jnp.int32)
    # Make some trailing tokens <pad> so the masks actually mask something
    pos = jnp.arange(seq_length)[None, :]
    src = jnp.where(pos < 6, src, src_pad_idx)
    trg = jnp.where(pos < 7, trg, trg_pad_idx)

    fwd = jax.jit(
        partial(
            transformer_forward,
            n_heads=n_heads,
            src_pad_idx=src_pad_idx,
            trg_pad_idx=trg_pad_idx,
        )
    )
    out = fwd(params, src, trg)
    out = jax.block_until_ready(out)

    assert out.shape == (batch, seq_length, v_size_dec), out.shape
    assert bool(jnp.all(jnp.isfinite(out)))
    print("KERNEL_OK")
</pallas_src>

<mosaic_0001>
module attributes {stable_mosaic.version = 11 : i64} {
  func.func @_add_layernorm_kernel(%arg0: i32, %arg1: memref<16x32xbf16, #tpu.memory_space<vmem>>, %arg2: memref<16x32xbf16, #tpu.memory_space<vmem>>, %arg3: memref<1x32xf32, #tpu.memory_space<vmem>>, %arg4: memref<1x32xf32, #tpu.memory_space<vmem>>, %arg5: memref<16x32xbf16, #tpu.memory_space<vmem>>) attributes {dimension_semantics = [#tpu.dimension_semantics<parallel>], iteration_bounds = array<i64: 1>, scalar_prefetch = 0 : i64, scratch_operands = 0 : i64, tpu.core_type = #tpu.core_type<tc>, window_params = [{transform_indices = @transform_0, window_bounds = array<i64: 16, 32>}, {transform_indices = @transform_1, window_bounds = array<i64: 16, 32>}, {pipeline_mode = #tpu.pipeline_mode<synchronous>, transform_indices = @transform_2, window_bounds = array<i64: 1, 32>}, {pipeline_mode = #tpu.pipeline_mode<synchronous>, transform_indices = @transform_3, window_bounds = array<i64: 1, 32>}, {transform_indices = @transform_4, window_bounds = array<i64: 16, 32>}]} {
    %c0 = arith.constant 0 : index
    %c0_0 = arith.constant 0 : index
    %0 = vector.load %arg1[%c0, %c0_0] : memref<16x32xbf16, #tpu.memory_space<vmem>>, vector<16x32xbf16>
    %1 = arith.extf %0 : vector<16x32xbf16> to vector<16x32xf32>
    %c0_1 = arith.constant 0 : index
    %c0_2 = arith.constant 0 : index
    %2 = vector.load %arg2[%c0_1, %c0_2] : memref<16x32xbf16, #tpu.memory_space<vmem>>, vector<16x32xbf16>
    %3 = arith.extf %2 : vector<16x32xbf16> to vector<16x32xf32>
    %4 = arith.addf %1, %3 : vector<16x32xf32>
    %cst = arith.constant dense<0.000000e+00> : vector<16xf32>
    %5 = vector.multi_reduction <add>, %4, %cst [1] : vector<16x32xf32> to vector<16xf32>
    %6 = vector.shape_cast %5 : vector<16xf32> to vector<16x1xf32>
    %cst_3 = arith.constant 3.200000e+01 : f32
    %7 = vector.broadcast %cst_3 : f32 to vector<16x1xf32>
    %8 = arith.divf %6, %7 : vector<16x1xf32>
    %9 = vector.broadcast %8 : vector<16x1xf32> to vector<16x32xf32>
    %10 = arith.subf %4, %9 : vector<16x32xf32>
    %11 = arith.mulf %10, %10 : vector<16x32xf32>
    %cst_4 = arith.constant dense<0.000000e+00> : vector<16xf32>
    %12 = vector.multi_reduction <add>, %11, %cst_4 [1] : vector<16x32xf32> to vector<16xf32>
    %13 = vector.shape_cast %12 : vector<16xf32> to vector<16x1xf32>
    %cst_5 = arith.constant 3.200000e+01 : f32
    %14 = vector.broadcast %cst_5 : f32 to vector<16x1xf32>
    %15 = arith.divf %13, %14 : vector<16x1xf32>
    %16 = vector.broadcast %8 : vector<16x1xf32> to vector<16x32xf32>
    %17 = arith.subf %4, %16 : vector<16x32xf32>
    %cst_6 = arith.constant 9.99999974E-6 : f32
    %18 = vector.broadcast %cst_6 : f32 to vector<16x1xf32>
    %19 = arith.addf %15, %18 : vector<16x1xf32>
    %20 = math.rsqrt %19 : vector<16x1xf32>
    %21 = vector.broadcast %20 : vector<16x1xf32> to vector<16x32xf32>
    %22 = arith.mulf %17, %21 : vector<16x32xf32>
    %c0_7 = arith.constant 0 : index
    %c0_8 = arith.constant 0 : index
    %23 = vector.load %arg3[%c0_7, %c0_8] : memref<1x32xf32, #tpu.memory_space<vmem>>, vector<1x32xf32>
    %24 = vector.broadcast %23 : vector<1x32xf32> to vector<16x32xf32>
    %25 = arith.mulf %22, %24 : vector<16x32xf32>
    %c0_9 = arith.constant 0 : index
    %c0_10 = arith.constant 0 : index
    %26 = vector.load %arg4[%c0_9, %c0_10] : memref<1x32xf32, #tpu.memory_space<vmem>>, vector<1x32xf32>
    %27 = vector.broadcast %26 : vector<1x32xf32> to vector<16x32xf32>
    %28 = arith.addf %25, %27 : vector<16x32xf32>
    %29 = arith.truncf %28 : vector<16x32xf32> to vector<16x32xbf16>
    %c0_11 = arith.constant 0 : index
    %c0_12 = arith.constant 0 : index
    %30 = vector.load %arg5[%c0_11, %c0_12] : memref<16x32xbf16, #tpu.memory_space<vmem>>, vector<16x32xbf16>
    tpu.vector_store %arg5[%c0_11, %c0_12], %29 {strides = array<i32>} : memref<16x32xbf16, #tpu.memory_space<vmem>>, vector<16x32xbf16>,
    return
  }
  func.func @transform_0(%arg0: i32) -> (i32, i32) {
    %c0_i32 = arith.constant 0 : i32
    %c0_i32_0 = arith.constant 0 : i32
    return %arg0, %c0_i32 : i32, i32
  }
  func.func @transform_1(%arg0: i32) -> (i32, i32) {
    %c0_i32 = arith.constant 0 : i32
    %c0_i32_0 = arith.constant 0 : i32
    return %arg0, %c0_i32 : i32, i32
  }
  func.func @transform_2(%arg0: i32) -> (i32, i32) {
    %c0_i32 = arith.constant 0 : i32
    %c0_i32_0 = arith.constant 0 : i32
    %c0_i32_1 = arith.constant 0 : i32
    return %c0_i32, %c0_i32_0 : i32, i32
  }
  func.func @transform_3(%arg0: i32) -> (i32, i32) {
    %c0_i32 = arith.constant 0 : i32
    %c0_i32_0 = arith.constant 0 : i32
    %c0_i32_1 = arith.constant 0 : i32
    return %c0_i32, %c0_i32_0 : i32, i32
  }
  func.func @transform_4(%arg0: i32) -> (i32, i32) {
    %c0_i32 = arith.constant 0 : i32
    %c0_i32_0 = arith.constant 0 : i32
    return %arg0, %c0_i32 : i32, i32
  }
}

module attributes {stable_mosaic.version = 11 : i64} {
  func.func @_linear_kernel(%arg0: i32, %arg1: i32, %arg2: i32, %arg3: memref<16x128xbf16, #tpu.memory_space<vmem>>, %arg4: memref<128x128xbf16, #tpu.memory_space<vmem>>, %arg5: memref<1x128xf32, #tpu.memory_space<vmem>>, %arg6: memref<16x128xbf16, #tpu.memory_space<vmem>>, %arg7: memref<16x128xf32, #tpu.memory_space<vmem>>) attributes {dimension_semantics = [#tpu.dimension_semantics<parallel>, #tpu.dimension_semantics<parallel>, #tpu.dimension_semantics<arbitrary>], iteration_bounds = array<i64: 1, 1, 1>, scalar_prefetch = 0 : i64, scratch_operands = 1 : i64, tpu.core_type = #tpu.core_type<tc>, window_params = [{transform_indices = @transform_0, window_bounds = array<i64: 16, 128>}, {transform_indices = @transform_1, window_bounds = array<i64: 128, 128>}, {transform_indices = @transform_2, window_bounds = array<i64: 1, 128>}, {transform_indices = @transform_3, window_bounds = array<i64: 16, 128>}]} {
    %c0_i32 = arith.constant 0 : i32
    %0 = arith.cmpi eq, %arg2, %c0_i32 : i32
    %1 = arith.extui %0 : i1 to i32
    %c0_i32_0 = arith.constant 0 : i32
    %2 = arith.cmpi ne, %1, %c0_i32_0 : i32
    scf.if %2 {
      %cst_10 = arith.constant 0.000000e+00 : f32
      %12 = vector.broadcast %cst_10 : f32 to vector<16x128xf32>
      %c0_11 = arith.constant 0 : index
      %c0_12 = arith.constant 0 : index
      %13 = vector.load %arg7[%c0_11, %c0_12] : memref<16x128xf32, #tpu.memory_space<vmem>>, vector<16x128xf32>
      tpu.vector_store %arg7[%c0_11, %c0_12], %12 {strides = array<i32>} : memref<16x128xf32, #tpu.memory_space<vmem>>, vector<16x128xf32>,
    } else {
    }
    %c0 = arith.constant 0 : index
    %c0_1 = arith.constant 0 : index
    %3 = vector.load %arg3[%c0, %c0_1] : memref<16x128xbf16, #tpu.memory_space<vmem>>, vector<16x128xbf16>
    %c0_2 = arith.constant 0 : index
    %c0_3 = arith.constant 0 : index
    %4 = vector.load %arg7[%c0_2, %c0_3] : memref<16x128xf32, #tpu.memory_space<vmem>>, vector<16x128xf32>
    %c0_4 = arith.constant 0 : index
    %c0_5 = arith.constant 0 : index
    %5 = vector.load %arg4[%c0_4, %c0_5] : memref<128x128xbf16, #tpu.memory_space<vmem>>, vector<128x128xbf16>
    %cst = arith.constant dense<0.000000e+00> : vector<16x128xf32>
    %6 = tpu.matmul %3, %5, %cst {dimension_numbers = #tpu.dot_dimension_numbers<[1], [0], [0], [1], [0, 0, 1, 1], [], []>} : vector<16x128xbf16>, vector<128x128xbf16>, vector<16x128xf32> -> vector<16x128xf32>
    %7 = arith.addf %4, %6 : vector<16x128xf32>
    %c0_6 = arith.constant 0 : index
    %c0_7 = arith.constant 0 : index
    %8 = vector.load %arg7[%c0_6, %c0_7] : memref<16x128xf32, #tpu.memory_space<vmem>>, vector<16x128xf32>
    tpu.vector_store %arg7[%c0_6, %c0_7], %7 {strides = array<i32>} : memref<16x128xf32, #tpu.memory_space<vmem>>, vector<16x128xf32>,
    %c0_i32_8 = arith.constant 0 : i32
    %9 = arith.cmpi eq, %arg2, %c0_i32_8 : i32
    %10 = arith.extui %9 : i1 to i32
    %c0_i32_9 = arith.constant 0 : i32
    %11 = arith.cmpi ne, %10, %c0_i32_9 : i32
    scf.if %11 {
      %c0_10 = arith.constant 0 : index
      %c0_11 = arith.constant 0 : index
      %12 = vector.load %arg7[%c0_10, %c0_11] : memref<16x128xf32, #tpu.memory_space<vmem>>, vector<16x128xf32>
      %c0_12 = arith.constant 0 : index
      %c0_13 = arith.constant 0 : index
      %13 = vector.load %arg5[%c0_12, %c0_13] : memref<1x128xf32, #tpu.memory_space<vmem>>, vector<1x128xf32>
      %14 = vector.broadcast %13 : vector<1x128xf32> to vector<16x128xf32>
      %15 = arith.addf %12, %14 : vector<16x128xf32>
      %16 = arith.truncf %15 : vector<16x128xf32> to vector<16x128xbf16>
      %c0_14 = arith.constant 0 : index
      %c0_15 = arith.constant 0 : index
      %17 = vector.load %arg6[%c0_14, %c0_15] : memref<16x128xbf16, #tpu.memory_space<vmem>>, vector<16x128xbf16>
      tpu.vector_store %arg6[%c0_14, %c0_15], %16 {strides = array<i32>} : memref<16x128xbf16, #tpu.memory_space<vmem>>, vector<16x128xbf16>,
    } else {
    }
    return
  }
  func.func @transform_0(%arg0: i32, %arg1: i32, %arg2: i32) -> (i32, i32) {
    %c0_i32 = arith.constant 0 : i32
    return %arg0, %arg2 : i32, i32
  }
  func.func @transform_1(%arg0: i32, %arg1: i32, %arg2: i32) -> (i32, i32) {
    %c0_i32 = arith.constant 0 : i32
    return %arg2, %arg1 : i32, i32
  }
  func.func @transform_2(%arg0: i32, %arg1: i32, %arg2: i32) -> (i32, i32) {
    %c0_i32 = arith.constant 0 : i32
    %c0_i32_0 = arith.constant 0 : i32
    return %c0_i32, %arg1 : i32, i32
  }
  func.func @transform_3(%arg0: i32, %arg1: i32, %arg2: i32) -> (i32, i32) {
    %c0_i32 = arith.constant 0 : i32
    return %arg0, %arg1 : i32, i32
  }
}

module attributes {stable_mosaic.version = 11 : i64} {
  func.func @_attention_kernel(%arg0: i32, %arg1: memref<1x4x8x8xbf16, #tpu.memory_space<vmem>>, %arg2: memref<1x4x8x8xbf16, #tpu.memory_space<vmem>>, %arg3: memref<1x4x8x8xbf16, #tpu.memory_space<vmem>>, %arg4: memref<1x1x8xi32, #tpu.memory_space<vmem>>, %arg5: memref<1x4x8x8xbf16, #tpu.memory_space<vmem>>) attributes {dimension_semantics = [#tpu.dimension_semantics<parallel>], iteration_bounds = array<i64: 2>, scalar_prefetch = 0 : i64, scratch_operands = 0 : i64, tpu.core_type = #tpu.core_type<tc>, window_params = [{transform_indices = @transform_0, window_bounds = array<i64: 1, 4, 8, 8>}, {transform_indices = @transform_1, window_bounds = array<i64: 1, 4, 8, 8>}, {transform_indices = @transform_2, window_bounds = array<i64: 1, 4, 8, 8>}, {transform_indices = @transform_3, window_bounds = array<i64: 1, 1, 8>}, {transform_indices = @transform_4, window_bounds = array<i64: 1, 4, 8, 8>}]} {
    %c0 = arith.constant 0 : index
    %c0_0 = arith.constant 0 : index
    %c0_1 = arith.constant 0 : index
    %c0_2 = arith.constant 0 : index
    %0 = vector.load %arg1[%c0, %c0_0, %c0_1, %c0_2] : memref<1x4x8x8xbf16, #tpu.memory_space<vmem>>, vector<1x4x8x8xbf16>
    %1 = vector.shape_cast %0 : vector<1x4x8x8xbf16> to vector<4x8x8xbf16>
    %c0_3 = arith.constant 0 : index
    %c0_4 = arith.constant 0 : index
    %c0_5 = arith.constant 0 : index
    %c0_6 = arith.constant 0 : index
    %2 = vector.load %arg2[%c0_3, %c0_4, %c0_5, %c0_6] : memref<1x4x8x8xbf16, #tpu.memory_space<vmem>>, vector<1x4x8x8xbf16>
    %3 = vector.shape_cast %2 : vector<1x4x8x8xbf16> to vector<4x8x8xbf16>
    %c0_7 = arith.constant 0 : index
    %c0_8 = arith.constant 0 : index
    %c0_9 = arith.constant 0 : index
    %c0_10 = arith.constant 0 : index
    %4 = vector.load %arg3[%c0_7, %c0_8, %c0_9, %c0_10] : memref<1x4x8x8xbf16, #tpu.memory_space<vmem>>, vector<1x4x8x8xbf16>
    %5 = vector.shape_cast %4 : vector<1x4x8x8xbf16> to vector<4x8x8xbf16>
    %cst = arith.constant dense<0.000000e+00> : vector<4x8x8xf32>
    %6 = tpu.matmul %1, %3, %cst {dimension_numbers = #tpu.dot_dimension_numbers<[2], [2], [1], [1], [0, 0, 0, 1, 1, 1], [0], [0]>} : vector<4x8x8xbf16>, vector<4x8x8xbf16>, vector<4x8x8xf32> -> vector<4x8x8xf32>
    %cst_11 = arith.constant 0.353553385 : f32
    %7 = vector.broadcast %cst_11 : f32 to vector<4x8x8xf32>
    %8 = arith.mulf %6, %7 : vector<4x8x8xf32>
    %c0_12 = arith.constant 0 : index
    %c0_13 = arith.constant 0 : index
    %c0_14 = arith.constant 0 : index
    %9 = vector.load %arg4[%c0_12, %c0_13, %c0_14] : memref<1x1x8xi32, #tpu.memory_space<vmem>>, vector<1x1x8xi32>
    %10 = vector.shape_cast %9 : vector<1x1x8xi32> to vector<1x8xi32>
    %c0_i32 = arith.constant 0 : i32
    %11 = vector.broadcast %c0_i32 : i32 to vector<1x8xi32>
    %12 = arith.cmpi sgt, %10, %11 : vector<1x8xi32>
    %13 = tpu.iota {dimensions = array<i32: 0>} : vector<8x8xi32>
    %14 = tpu.iota {dimensions = array<i32: 1>} : vector<8x8xi32>
    %15 = arith.cmpi sle, %14, %13 : vector<8x8xi32>
    %16 = vector.broadcast %12 : vector<1x8xi1> to vector<8x8xi1>
    %17 = arith.andi %16, %15 : vector<8x8xi1>
    %18 = vector.shape_cast %17 : vector<8x8xi1> to vector<1x8x8xi1>
    %cst_15 = arith.constant -1.000000e+09 : f32
    %19 = vector.shape_cast %18 : vector<1x8x8xi1> to vector<1x8x8xi1>
    %20 = vector.broadcast %19 : vector<1x8x8xi1> to vector<4x8x8xi1>
    %21 = vector.broadcast %cst_15 : f32 to vector<4x8x8xf32>
    %22 = arith.select %20, %8, %21 : vector<4x8x8xi1>, vector<4x8x8xf32>
    %cst_16 = arith.constant dense<0xFF800000> : vector<4x8xf32>
    %23 = vector.multi_reduction <maximumf>, %22, %cst_16 [2] : vector<4x8x8xf32> to vector<4x8xf32>
    %24 = vector.shape_cast %23 : vector<4x8xf32> to vector<4x8x1xf32>
    %25 = vector.broadcast %24 : vector<4x8x1xf32> to vector<4x8x8xf32>
    %26 = arith.subf %22, %25 : vector<4x8x8xf32>
    %27 = math.exp %26 : vector<4x8x8xf32>
    %cst_17 = arith.constant dense<0.000000e+00> : vector<4x8xf32>
    %28 = vector.multi_reduction <add>, %27, %cst_17 [2] : vector<4x8x8xf32> to vector<4x8xf32>
    %29 = vector.shape_cast %28 : vector<4x8xf32> to vector<4x8x1xf32>
    %30 = tpu.reciprocal %29 {approx = true} : vector<4x8x1xf32> -> vector<4x8x1xf32>
    %31 = vector.broadcast %30 : vector<4x8x1xf32> to vector<4x8x8xf32>
    %32 = arith.mulf %27, %31 : vector<4x8x8xf32>
    %33 = arith.truncf %32 : vector<4x8x8xf32> to vector<4x8x8xbf16>
    %cst_18 = arith.constant dense<0.000000e+00> : vector<4x8x8xf32>
    %34 = tpu.matmul %33, %5, %cst_18 {dimension_numbers = #tpu.dot_dimension_numbers<[2], [1], [1], [2], [0, 0, 0, 1, 1, 2], [0], [0]>} : vector<4x8x8xbf16>, vector<4x8x8xbf16>, vector<4x8x8xf32> -> vector<4x8x8xf32>
    %35 = arith.truncf %34 : vector<4x8x8xf32> to vector<4x8x8xbf16>
    %c0_19 = arith.constant 0 : index
    %c0_20 = arith.constant 0 : index
    %c0_21 = arith.constant 0 : index
    %c0_22 = arith.constant 0 : index
    %36 = vector.load %arg5[%c0_19, %c0_20, %c0_21, %c0_22] : memref<1x4x8x8xbf16, #tpu.memory_space<vmem>>, vector<1x4x8x8xbf16>
    %37 = vector.shape_cast %36 : vector<1x4x8x8xbf16> to vector<4x8x8xbf16>
    %38 = vector.shape_cast %35 : vector<4x8x8xbf16> to vector<1x4x8x8xbf16>
    tpu.vector_store %arg5[%c0_19, %c0_20, %c0_21, %c0_22], %38 {strides = array<i32>} : memref<1x4x8x8xbf16, #tpu.memory_space<vmem>>, vector<1x4x8x8xbf16>,
    return
  }
  func.func @transform_0(%arg0: i32) -> (i32, i32, i32, i32) {
    %c0_i32 = arith.constant 0 : i32
    %c0_i32_0 = arith.constant 0 : i32
    %c0_i32_1 = arith.constant 0 : i32
    %c0_i32_2 = arith.constant 0 : i32
    return %arg0, %c0_i32, %c0_i32_0, %c0_i32_1 : i32, i32, i32, i32
  }
  func.func @transform_1(%arg0: i32) -> (i32, i32, i32, i32) {
    %c0_i32 = arith.constant 0 : i32
    %c0_i32_0 = arith.constant 0 : i32
    %c0_i32_1 = arith.constant 0 : i32
    %c0_i32_2 = arith.constant 0 : i32
    return %arg0, %c0_i32, %c0_i32_0, %c0_i32_1 : i32, i32, i32, i32
  }
  func.func @transform_2(%arg0: i32) -> (i32, i32, i32, i32) {
    %c0_i32 = arith.constant 0 : i32
    %c0_i32_0 = arith.constant 0 : i32
    %c0_i32_1 = arith.constant 0 : i32
    %c0_i32_2 = arith.constant 0 : i32
    return %arg0, %c0_i32, %c0_i32_0, %c0_i32_1 : i32, i32, i32, i32
  }
  func.func @transform_3(%arg0: i32) -> (i32, i32, i32) {
    %c0_i32 = arith.constant 0 : i32
    %c0_i32_0 = arith.constant 0 : i32
    %c0_i32_1 = arith.constant 0 : i32
    return %arg0, %c0_i32, %c0_i32_0 : i32, i32, i32
  }
  func.func @transform_4(%arg0: i32) -> (i32, i32, i32, i32) {
    %c0_i32 = arith.constant 0 : i32
    %c0_i32_0 = arith.constant 0 : i32
    %c0_i32_1 = arith.constant 0 : i32
    %c0_i32_2 = arith.constant 0 : i32
    return %arg0, %c0_i32, %c0_i32_0, %c0_i32_1 : i32, i32, i32, i32
  }
}

module attributes {stable_mosaic.version = 11 : i64} {
  func.func @_attention_kernel(%arg0: i32, %arg1: memref<1x4x8x8xbf16, #tpu.memory_space<vmem>>, %arg2: memref<1x4x8x8xbf16, #tpu.memory_space<vmem>>, %arg3: memref<1x4x8x8xbf16, #tpu.memory_space<vmem>>, %arg4: memref<1x1x8xi32, #tpu.memory_space<vmem>>, %arg5: memref<1x4x8x8xbf16, #tpu.memory_space<vmem>>) attributes {dimension_semantics = [#tpu.dimension_semantics<parallel>], iteration_bounds = array<i64: 2>, scalar_prefetch = 0 : i64, scratch_operands = 0 : i64, tpu.core_type = #tpu.core_type<tc>, window_params = [{transform_indices = @transform_0, window_bounds = array<i64: 1, 4, 8, 8>}, {transform_indices = @transform_1, window_bounds = array<i64: 1, 4, 8, 8>}, {transform_indices = @transform_2, window_bounds = array<i64: 1, 4, 8, 8>}, {transform_indices = @transform_3, window_bounds = array<i64: 1, 1, 8>}, {transform_indices = @transform_4, window_bounds = array<i64: 1, 4, 8, 8>}]} {
    %c0 = arith.constant 0 : index
    %c0_0 = arith.constant 0 : index
    %c0_1 = arith.constant 0 : index
    %c0_2 = arith.constant 0 : index
    %0 = vector.load %arg1[%c0, %c0_0, %c0_1, %c0_2] : memref<1x4x8x8xbf16, #tpu.memory_space<vmem>>, vector<1x4x8x8xbf16>
    %1 = vector.shape_cast %0 : vector<1x4x8x8xbf16> to vector<4x8x8xbf16>
    %c0_3 = arith.constant 0 : index
    %c0_4 = arith.constant 0 : index
    %c0_5 = arith.constant 0 : index
    %c0_6 = arith.constant 0 : index
    %2 = vector.load %arg2[%c0_3, %c0_4, %c0_5, %c0_6] : memref<1x4x8x8xbf16, #tpu.memory_space<vmem>>, vector<1x4x8x8xbf16>
    %3 = vector.shape_cast %2 : vector<1x4x8x8xbf16> to vector<4x8x8xbf16>
    %c0_7 = arith.constant 0 : index
    %c0_8 = arith.constant 0 : index
    %c0_9 = arith.constant 0 : index
    %c0_10 = arith.constant 0 : index
    %4 = vector.load %arg3[%c0_7, %c0_8, %c0_9, %c0_10] : memref<1x4x8x8xbf16, #tpu.memory_space<vmem>>, vector<1x4x8x8xbf16>
    %5 = vector.shape_cast %4 : vector<1x4x8x8xbf16> to vector<4x8x8xbf16>
    %cst = arith.constant dense<0.000000e+00> : vector<4x8x8xf32>
    %6 = tpu.matmul %1, %3, %cst {dimension_numbers = #tpu.dot_dimension_numbers<[2], [2], [1], [1], [0, 0, 0, 1, 1, 1], [0], [0]>} : vector<4x8x8xbf16>, vector<4x8x8xbf16>, vector<4x8x8xf32> -> vector<4x8x8xf32>
    %cst_11 = arith.constant 0.353553385 : f32
    %7 = vector.broadcast %cst_11 : f32 to vector<4x8x8xf32>
    %8 = arith.mulf %6, %7 : vector<4x8x8xf32>
    %c0_12 = arith.constant 0 : index
    %c0_13 = arith.constant 0 : index
    %c0_14 = arith.constant 0 : index
    %9 = vector.load %arg4[%c0_12, %c0_13, %c0_14] : memref<1x1x8xi32, #tpu.memory_space<vmem>>, vector<1x1x8xi32>
    %10 = vector.shape_cast %9 : vector<1x1x8xi32> to vector<1x8xi32>
    %c0_i32 = arith.constant 0 : i32
    %11 = vector.broadcast %c0_i32 : i32 to vector<1x8xi32>
    %12 = arith.cmpi sgt, %10, %11 : vector<1x8xi32>
    %13 = vector.shape_cast %12 : vector<1x8xi1> to vector<1x1x8xi1>
    %cst_15 = arith.constant -1.000000e+09 : f32
    %14 = vector.shape_cast %13 : vector<1x1x8xi1> to vector<1x1x8xi1>
    %15 = vector.broadcast %14 : vector<1x1x8xi1> to vector<4x8x8xi1>
    %16 = vector.broadcast %cst_15 : f32 to vector<4x8x8xf32>
    %17 = arith.select %15, %8, %16 : vector<4x8x8xi1>, vector<4x8x8xf32>
    %cst_16 = arith.constant dense<0xFF800000> : vector<4x8xf32>
    %18 = vector.multi_reduction <maximumf>, %17, %cst_16 [2] : vector<4x8x8xf32> to vector<4x8xf32>
    %19 = vector.shape_cast %18 : vector<4x8xf32> to vector<4x8x1xf32>
    %20 = vector.broadcast %19 : vector<4x8x1xf32> to vector<4x8x8xf32>
    %21 = arith.subf %17, %20 : vector<4x8x8xf32>
    %22 = math.exp %21 : vector<4x8x8xf32>
    %cst_17 = arith.constant dense<0.000000e+00> : vector<4x8xf32>
    %23 = vector.multi_reduction <add>, %22, %cst_17 [2] : vector<4x8x8xf32> to vector<4x8xf32>
    %24 = vector.shape_cast %23 : vector<4x8xf32> to vector<4x8x1xf32>
    %25 = tpu.reciprocal %24 {approx = true} : vector<4x8x1xf32> -> vector<4x8x1xf32>
    %26 = vector.broadcast %25 : vector<4x8x1xf32> to vector<4x8x8xf32>
    %27 = arith.mulf %22, %26 : vector<4x8x8xf32>
    %28 = arith.truncf %27 : vector<4x8x8xf32> to vector<4x8x8xbf16>
    %cst_18 = arith.constant dense<0.000000e+00> : vector<4x8x8xf32>
    %29 = tpu.matmul %28, %5, %cst_18 {dimension_numbers = #tpu.dot_dimension_numbers<[2], [1], [1], [2], [0, 0, 0, 1, 1, 2], [0], [0]>} : vector<4x8x8xbf16>, vector<4x8x8xbf16>, vector<4x8x8xf32> -> vector<4x8x8xf32>
    %30 = arith.truncf %29 : vector<4x8x8xf32> to vector<4x8x8xbf16>
    %c0_19 = arith.constant 0 : index
    %c0_20 = arith.constant 0 : index
    %c0_21 = arith.constant 0 : index
    %c0_22 = arith.constant 0 : index
    %31 = vector.load %arg5[%c0_19, %c0_20, %c0_21, %c0_22] : memref<1x4x8x8xbf16, #tpu.memory_space<vmem>>, vector<1x4x8x8xbf16>
    %32 = vector.shape_cast %31 : vector<1x4x8x8xbf16> to vector<4x8x8xbf16>
    %33 = vector.shape_cast %30 : vector<4x8x8xbf16> to vector<1x4x8x8xbf16>
    tpu.vector_store %arg5[%c0_19, %c0_20, %c0_21, %c0_22], %33 {strides = array<i32>} : memref<1x4x8x8xbf16, #tpu.memory_space<vmem>>, vector<1x4x8x8xbf16>,
    return
  }
  func.func @transform_0(%arg0: i32) -> (i32, i32, i32, i32) {
    %c0_i32 = arith.constant 0 : i32
    %c0_i32_0 = arith.constant 0 : i32
    %c0_i32_1 = arith.constant 0 : i32
    %c0_i32_2 = arith.constant 0 : i32
    return %arg0, %c0_i32, %c0_i32_0, %c0_i32_1 : i32, i32, i32, i32
  }
  func.func @transform_1(%arg0: i32) -> (i32, i32, i32, i32) {
    %c0_i32 = arith.constant 0 : i32
    %c0_i32_0 = arith.constant 0 : i32
    %c0_i32_1 = arith.constant 0 : i32
    %c0_i32_2 = arith.constant 0 : i32
    return %arg0, %c0_i32, %c0_i32_0, %c0_i32_1 : i32, i32, i32, i32
  }
  func.func @transform_2(%arg0: i32) -> (i32, i32, i32, i32) {
    %c0_i32 = arith.constant 0 : i32
    %c0_i32_0 = arith.constant 0 : i32
    %c0_i32_1 = arith.constant 0 : i32
    %c0_i32_2 = arith.constant 0 : i32
    return %arg0, %c0_i32, %c0_i32_0, %c0_i32_1 : i32, i32, i32, i32
  }
  func.func @transform_3(%arg0: i32) -> (i32, i32, i32) {
    %c0_i32 = arith.constant 0 : i32
    %c0_i32_0 = arith.constant 0 : i32
    %c0_i32_1 = arith.constant 0 : i32
    return %arg0, %c0_i32, %c0_i32_0 : i32, i32, i32
  }
  func.func @transform_4(%arg0: i32) -> (i32, i32, i32, i32) {
    %c0_i32 = arith.constant 0 : i32
    %c0_i32_0 = arith.constant 0 : i32
    %c0_i32_1 = arith.constant 0 : i32
    %c0_i32_2 = arith.constant 0 : i32
    return %arg0, %c0_i32, %c0_i32_0, %c0_i32_1 : i32, i32, i32, i32
  }
}

module attributes {stable_mosaic.version = 11 : i64} {
  func.func @_linear_kernel(%arg0: i32, %arg1: i32, %arg2: i32, %arg3: memref<16x128xbf16, #tpu.memory_space<vmem>>, %arg4: memref<128x128xbf16, #tpu.memory_space<vmem>>, %arg5: memref<1x128xf32, #tpu.memory_space<vmem>>, %arg6: memref<16x128xbf16, #tpu.memory_space<vmem>>, %arg7: memref<16x128xf32, #tpu.memory_space<vmem>>) attributes {dimension_semantics = [#tpu.dimension_semantics<parallel>, #tpu.dimension_semantics<parallel>, #tpu.dimension_semantics<arbitrary>], iteration_bounds = array<i64: 1, 1, 1>, scalar_prefetch = 0 : i64, scratch_operands = 1 : i64, tpu.core_type = #tpu.core_type<tc>, window_params = [{transform_indices = @transform_0, window_bounds = array<i64: 16, 128>}, {transform_indices = @transform_1, window_bounds = array<i64: 128, 128>}, {transform_indices = @transform_2, window_bounds = array<i64: 1, 128>}, {transform_indices = @transform_3, window_bounds = array<i64: 16, 128>}]} {
    %c0_i32 = arith.constant 0 : i32
    %0 = arith.cmpi eq, %arg2, %c0_i32 : i32
    %1 = arith.extui %0 : i1 to i32
    %c0_i32_0 = arith.constant 0 : i32
    %2 = arith.cmpi ne, %1, %c0_i32_0 : i32
    scf.if %2 {
      %cst_10 = arith.constant 0.000000e+00 : f32
      %12 = vector.broadcast %cst_10 : f32 to vector<16x128xf32>
      %c0_11 = arith.constant 0 : index
      %c0_12 = arith.constant 0 : index
      %13 = vector.load %arg7[%c0_11, %c0_12] : memref<16x128xf32, #tpu.memory_space<vmem>>, vector<16x128xf32>
      tpu.vector_store %arg7[%c0_11, %c0_12], %12 {strides = array<i32>} : memref<16x128xf32, #tpu.memory_space<vmem>>, vector<16x128xf32>,
    } else {
    }
    %c0 = arith.constant 0 : index
    %c0_1 = arith.constant 0 : index
    %3 = vector.load %arg3[%c0, %c0_1] : memref<16x128xbf16, #tpu.memory_space<vmem>>, vector<16x128xbf16>
    %c0_2 = arith.constant 0 : index
    %c0_3 = arith.constant 0 : index
    %4 = vector.load %arg7[%c0_2, %c0_3] : memref<16x128xf32, #tpu.memory_space<vmem>>, vector<16x128xf32>
    %c0_4 = arith.constant 0 : index
    %c0_5 = arith.constant 0 : index
    %5 = vector.load %arg4[%c0_4, %c0_5] : memref<128x128xbf16, #tpu.memory_space<vmem>>, vector<128x128xbf16>
    %cst = arith.constant dense<0.000000e+00> : vector<16x128xf32>
    %6 = tpu.matmul %3, %5, %cst {dimension_numbers = #tpu.dot_dimension_numbers<[1], [0], [0], [1], [0, 0, 1, 1], [], []>} : vector<16x128xbf16>, vector<128x128xbf16>, vector<16x128xf32> -> vector<16x128xf32>
    %7 = arith.addf %4, %6 : vector<16x128xf32>
    %c0_6 = arith.constant 0 : index
    %c0_7 = arith.constant 0 : index
    %8 = vector.load %arg7[%c0_6, %c0_7] : memref<16x128xf32, #tpu.memory_space<vmem>>, vector<16x128xf32>
    tpu.vector_store %arg7[%c0_6, %c0_7], %7 {strides = array<i32>} : memref<16x128xf32, #tpu.memory_space<vmem>>, vector<16x128xf32>,
    %c0_i32_8 = arith.constant 0 : i32
    %9 = arith.cmpi eq, %arg2, %c0_i32_8 : i32
    %10 = arith.extui %9 : i1 to i32
    %c0_i32_9 = arith.constant 0 : i32
    %11 = arith.cmpi ne, %10, %c0_i32_9 : i32
    scf.if %11 {
      %c0_10 = arith.constant 0 : index
      %c0_11 = arith.constant 0 : index
      %12 = vector.load %arg7[%c0_10, %c0_11] : memref<16x128xf32, #tpu.memory_space<vmem>>, vector<16x128xf32>
      %c0_12 = arith.constant 0 : index
      %c0_13 = arith.constant 0 : index
      %13 = vector.load %arg5[%c0_12, %c0_13] : memref<1x128xf32, #tpu.memory_space<vmem>>, vector<1x128xf32>
      %14 = vector.broadcast %13 : vector<1x128xf32> to vector<16x128xf32>
      %15 = arith.addf %12, %14 : vector<16x128xf32>
      %cst_14 = arith.constant 0.000000e+00 : f32
      %16 = vector.broadcast %cst_14 : f32 to vector<16x128xf32>
      %17 = arith.maximumf %15, %16 : vector<16x128xf32>
      %18 = arith.truncf %17 : vector<16x128xf32> to vector<16x128xbf16>
      %c0_15 = arith.constant 0 : index
      %c0_16 = arith.constant 0 : index
      %19 = vector.load %arg6[%c0_15, %c0_16] : memref<16x128xbf16, #tpu.memory_space<vmem>>, vector<16x128xbf16>
      tpu.vector_store %arg6[%c0_15, %c0_16], %18 {strides = array<i32>} : memref<16x128xbf16, #tpu.memory_space<vmem>>, vector<16x128xbf16>,
    } else {
    }
    return
  }
  func.func @transform_0(%arg0: i32, %arg1: i32, %arg2: i32) -> (i32, i32) {
    %c0_i32 = arith.constant 0 : i32
    return %arg0, %arg2 : i32, i32
  }
  func.func @transform_1(%arg0: i32, %arg1: i32, %arg2: i32) -> (i32, i32) {
    %c0_i32 = arith.constant 0 : i32
    return %arg2, %arg1 : i32, i32
  }
  func.func @transform_2(%arg0: i32, %arg1: i32, %arg2: i32) -> (i32, i32) {
    %c0_i32 = arith.constant 0 : i32
    %c0_i32_0 = arith.constant 0 : i32
    return %c0_i32, %arg1 : i32, i32
  }
  func.func @transform_3(%arg0: i32, %arg1: i32, %arg2: i32) -> (i32, i32) {
    %c0_i32 = arith.constant 0 : i32
    return %arg0, %arg1 : i32, i32
  }
}

module attributes {stable_mosaic.version = 11 : i64} {
  func.func @_linear_kernel(%arg0: i32, %arg1: i32, %arg2: i32, %arg3: memref<16x128xbf16, #tpu.memory_space<vmem>>, %arg4: memref<128x128xbf16, #tpu.memory_space<vmem>>, %arg5: memref<1x128xf32, #tpu.memory_space<vmem>>, %arg6: memref<16x128xf32, #tpu.memory_space<vmem>>, %arg7: memref<16x128xf32, #tpu.memory_space<vmem>>) attributes {dimension_semantics = [#tpu.dimension_semantics<parallel>, #tpu.dimension_semantics<parallel>, #tpu.dimension_semantics<arbitrary>], iteration_bounds = array<i64: 1, 1, 1>, scalar_prefetch = 0 : i64, scratch_operands = 1 : i64, tpu.core_type = #tpu.core_type<tc>, window_params = [{transform_indices = @transform_0, window_bounds = array<i64: 16, 128>}, {transform_indices = @transform_1, window_bounds = array<i64: 128, 128>}, {transform_indices = @transform_2, window_bounds = array<i64: 1, 128>}, {transform_indices = @transform_3, window_bounds = array<i64: 16, 128>}]} {
    %c0_i32 = arith.constant 0 : i32
    %0 = arith.cmpi eq, %arg2, %c0_i32 : i32
    %1 = arith.extui %0 : i1 to i32
    %c0_i32_0 = arith.constant 0 : i32
    %2 = arith.cmpi ne, %1, %c0_i32_0 : i32
    scf.if %2 {
      %cst_10 = arith.constant 0.000000e+00 : f32
      %12 = vector.broadcast %cst_10 : f32 to vector<16x128xf32>
      %c0_11 = arith.constant 0 : index
      %c0_12 = arith.constant 0 : index
      %13 = vector.load %arg7[%c0_11, %c0_12] : memref<16x128xf32, #tpu.memory_space<vmem>>, vector<16x128xf32>
      tpu.vector_store %arg7[%c0_11, %c0_12], %12 {strides = array<i32>} : memref<16x128xf32, #tpu.memory_space<vmem>>, vector<16x128xf32>,
    } else {
    }
    %c0 = arith.constant 0 : index
    %c0_1 = arith.constant 0 : index
    %3 = vector.load %arg3[%c0, %c0_1] : memref<16x128xbf16, #tpu.memory_space<vmem>>, vector<16x128xbf16>
    %c0_2 = arith.constant 0 : index
    %c0_3 = arith.constant 0 : index
    %4 = vector.load %arg7[%c0_2, %c0_3] : memref<16x128xf32, #tpu.memory_space<vmem>>, vector<16x128xf32>
    %c0_4 = arith.constant 0 : index
    %c0_5 = arith.constant 0 : index
    %5 = vector.load %arg4[%c0_4, %c0_5] : memref<128x128xbf16, #tpu.memory_space<vmem>>, vector<128x128xbf16>
    %cst = arith.constant dense<0.000000e+00> : vector<16x128xf32>
    %6 = tpu.matmul %3, %5, %cst {dimension_numbers = #tpu.dot_dimension_numbers<[1], [0], [0], [1], [0, 0, 1, 1], [], []>} : vector<16x128xbf16>, vector<128x128xbf16>, vector<16x128xf32> -> vector<16x128xf32>
    %7 = arith.addf %4, %6 : vector<16x128xf32>
    %c0_6 = arith.constant 0 : index
    %c0_7 = arith.constant 0 : index
    %8 = vector.load %arg7[%c0_6, %c0_7] : memref<16x128xf32, #tpu.memory_space<vmem>>, vector<16x128xf32>
    tpu.vector_store %arg7[%c0_6, %c0_7], %7 {strides = array<i32>} : memref<16x128xf32, #tpu.memory_space<vmem>>, vector<16x128xf32>,
    %c0_i32_8 = arith.constant 0 : i32
    %9 = arith.cmpi eq, %arg2, %c0_i32_8 : i32
    %10 = arith.extui %9 : i1 to i32
    %c0_i32_9 = arith.constant 0 : i32
    %11 = arith.cmpi ne, %10, %c0_i32_9 : i32
    scf.if %11 {
      %c0_10 = arith.constant 0 : index
      %c0_11 = arith.constant 0 : index
      %12 = vector.load %arg7[%c0_10, %c0_11] : memref<16x128xf32, #tpu.memory_space<vmem>>, vector<16x128xf32>
      %c0_12 = arith.constant 0 : index
      %c0_13 = arith.constant 0 : index
      %13 = vector.load %arg5[%c0_12, %c0_13] : memref<1x128xf32, #tpu.memory_space<vmem>>, vector<1x128xf32>
      %14 = vector.broadcast %13 : vector<1x128xf32> to vector<16x128xf32>
      %15 = arith.addf %12, %14 : vector<16x128xf32>
      %c0_14 = arith.constant 0 : index
      %c0_15 = arith.constant 0 : index
      %16 = vector.load %arg6[%c0_14, %c0_15] : memref<16x128xf32, #tpu.memory_space<vmem>>, vector<16x128xf32>
      tpu.vector_store %arg6[%c0_14, %c0_15], %15 {strides = array<i32>} : memref<16x128xf32, #tpu.memory_space<vmem>>, vector<16x128xf32>,
    } else {
    }
    return
  }
  func.func @transform_0(%arg0: i32, %arg1: i32, %arg2: i32) -> (i32, i32) {
    %c0_i32 = arith.constant 0 : i32
    return %arg0, %arg2 : i32, i32
  }
  func.func @transform_1(%arg0: i32, %arg1: i32, %arg2: i32) -> (i32, i32) {
    %c0_i32 = arith.constant 0 : i32
    return %arg2, %arg1 : i32, i32
  }
  func.func @transform_2(%arg0: i32, %arg1: i32, %arg2: i32) -> (i32, i32) {
    %c0_i32 = arith.constant 0 : i32
    %c0_i32_0 = arith.constant 0 : i32
    return %c0_i32, %arg1 : i32, i32
  }
  func.func @transform_3(%arg0: i32, %arg1: i32, %arg2: i32) -> (i32, i32) {
    %c0_i32 = arith.constant 0 : i32
    return %arg0, %arg1 : i32, i32
  }
}

</mosaic_0001>

<bundles_post_ra>
// kernel: transformer_forward.53
= control target key start
LH: loop header
LB: loop body
LE: loop exit
PB: predicated region body
PF: predicated region fallthrough
CT: control target
= control target key end

     0   :  { %v227_v0 = vmov 0.0   ;;  %vm228_vm0 = vmmov 0   ;;  %s282_s1 = inlined_call_operand.vmem [shape: bf16[128,128], index: 1, kind: input, shape index: {}]   ;;  %s283_s0 = inlined_call_operand.vmem [shape: bf16[16,128], index: 0, kind: input, shape index: {}]   ;;  %s284_s2 = inlined_call_operand.vmem [shape: f32[1,128], index: 2, kind: input, shape index: {}]   ;;  %s285_s3 = inlined_call_operand.vmem [shape: bf16[16,128], index: 3, kind: output, shape index: {}]  }
   0x1   :  { %196 = vmatprep.subr.bf16.mxu0 %v227_v0  ;;  %v218_v1 = vld [vmem:[%s282_s1] sm:$0xff]   ;;  %212 = vmatprep.mubr.msk.bf16.mxu0 %vm228_vm0, %v227_v0  ;;  %v219_v2 = vld [vmem:[%s282_s1 + $0x8] sm:$0xff]   ;;  %v220_v3 = vld [vmem:[%s282_s1 + $0x10] sm:$0xff]  }
   0x2   :  { %197 = vmatpush3.bf16.msra.mxu0 %v218_v1  ;;  %v221_v4 = vld [vmem:[%s282_s1 + $0x18] sm:$0xff]   ;;  %v222_v5 = vld [vmem:[%s282_s1 + $0x20] sm:$0xff]   ;;  %v223_v6 = vld [vmem:[%s282_s1 + $0x28] sm:$0xff]  }
   0x3   :  { %198 = vmatprep.subr.bf16.mxu0 %v227_v0  ;;  %v224_v7 = vld [vmem:[%s282_s1 + $0x30] sm:$0xff]   ;;  %v225_v8 = vld [vmem:[%s282_s1 + $0x38] sm:$0xff]   ;;  %v226_v9 = vld [vmem:[%s283_s0] sm:$0xff]  }
   0x4   :  { %v177_v11 = vld [vmem:[%s284_s2] ss:$0 sm:$0xff] }
   0x6   :  { %199 = vmatpush3.bf16.msra.mxu0 %v219_v2 }
   0x7   :  { %200 = vmatprep.subr.bf16.mxu0 %v227_v0 }
   0xa   :  { %201 = vmatpush3.bf16.msra.mxu0 %v220_v3 }
   0xb   :  { %202 = vmatprep.subr.bf16.mxu0 %v227_v0 }
   0xe   :  { %203 = vmatpush3.bf16.msra.mxu0 %v221_v4 }
   0xf   :  { %204 = vmatprep.subr.bf16.mxu0 %v227_v0 }
  0x12   :  { %205 = vmatpush3.bf16.msra.mxu0 %v222_v5 }
  0x13   :  { %206 = vmatprep.subr.bf16.mxu0 %v227_v0 }
  0x16   :  { %207 = vmatpush3.bf16.msra.mxu0 %v223_v6 }
  0x17   :  { %208 = vmatprep.subr.bf16.mxu0 %v227_v0 }
  0x1a   :  { %209 = vmatpush3.bf16.msra.mxu0 %v224_v7 }
  0x1b   :  { %210 = vmatprep.subr.bf16.mxu0 %v227_v0 }
  0x1e   :  { %211 = vmatpush3.bf16.msra.mxu0 %v225_v8 }
  0x21   :  { %213 = vmatmul.mubr.bf16.vlgmr.msra.gmra.mrb[0].mxu0 %v226_v9 }
  0xf4   :  { %v129_v10 = vpop.f32.mrb[0].mxu0 }
  0xf5   :  { %v214_v12 = vpop.f32.mrb[1].mxu0  ;;  %v152_v14 = vadd.f32 %v177_v11, %v129_v10 }
  0xf6   :  { %v132_v13 = vpop.f32.mrb[2].mxu0 }
  0xf7   :  { %v153_v15 = vadd.f32 %v177_v11, %v132_v13  ;;  %v215_v16 = vpop.f32.mrb[3].mxu0 }
  0xf9   :  { %v185_v17 = vpack.c.bf16 %v153_v15, %v152_v14 }
  0xfb   :  { %186 = vst [vmem:[%s285_s3] sm:$0xff] %v185_v17  }

// kernel: transformer_forward.56
= control target key start
LH: loop header
LB: loop body
LE: loop exit
PB: predicated region body
PF: predicated region fallthrough
CT: control target
= control target key end

     0   :  { %vm27_vm0 = vcmask 261120   ;;  %vm81_vm1 = vcmask 257024   ;;  %s153_s0 = inlined_call_operand.vmem [shape: bf16[16,32], index: 0, kind: input, shape index: {}]   ;;  %s154_s1 = inlined_call_operand.vmem [shape: bf16[16,32], index: 1, kind: input, shape index: {}]   ;;  %s155_s2 = inlined_call_operand.vmem [shape: f32[1,32], index: 2, kind: input, shape index: {}]   ;;  %s156_s3 = inlined_call_operand.vmem [shape: f32[1,32], index: 3, kind: input, shape index: {}]   ;;  %s157_s4 = inlined_call_operand.vmem [shape: bf16[16,32], index: 4, kind: output, shape index: {}]  }
   0x1   :  { %v95_v0 = vld [vmem:[%s153_s0] sm:$0xff]  }
   0x2   :  { %v99_v1 = vld [vmem:[%s154_s1] sm:$0xff]   ;;  %v96_v2 = vunpack.c.l.bf16 %v95_v0  ;;  %v97_v4 = vunpack.c.h.bf16 %v95_v0 }
   0x3   :  { %v100_v3 = vunpack.c.l.bf16 %v99_v1  ;;  %v101_v5 = vunpack.c.h.bf16 %v99_v1  ;;  %v88_v27 = vld [vmem:[%s155_s2] ss:$0 sm:$0xff] }
   0x4   :  { %v89_v29 = vld [vmem:[%s156_s3] ss:$0 sm:$0xff] }
   0x5   :  { %v25_v6 = vadd.f32 %v100_v3, %v96_v2  ;;  %v26_v7 = vadd.f32 %v101_v5, %v97_v4 }
   0x7   :  { %v28_v8 = vsel %vm27_vm0, %v25_v6, 0.0  ;;  %v31_v9 = vsel %vm27_vm0, %v26_v7, 0.0 }
   0x8   :  { %29 = vadd.xlane.f32.xlu0 %v28_v8 }
   0xc   :  { %32 = vadd.xlane.f32.xlu0 %v31_v9 }
  0x95   :  { %v30_v10 = vpop.xlane.xlu0 %29 }
  0x96   :  { %v35_v11 = vmul.f32 0.03125, %v30_v10 }
  0x98   :  { %v37_v12 = vsub.f32 %v25_v6, %v35_v11 }
  0x99   :  { %v33_v13 = vpop.xlane.xlu0 %32 }
  0x9a   :  { %v36_v14 = vmul.f32 0.03125, %v33_v13  ;;  %v39_v15 = vmul.f32 %v37_v12, %v37_v12 }
  0x9c   :  { %v38_v16 = vsub.f32 %v26_v7, %v36_v14  ;;  %v41_v17 = vsel %vm27_vm0, %v39_v15, 0.0 }
  0x9d   :  { %42 = vadd.xlane.f32.xlu1 %v41_v17 }
  0x9e   :  { %v40_v18 = vmul.f32 %v38_v16, %v38_v16 }
  0xa0   :  { %v44_v19 = vsel %vm27_vm0, %v40_v18, 0.0 }
  0xa1   :  { %45 = vadd.xlane.f32.xlu1 %v44_v19 }
 0x12a   :  { %v43_v20 = vpop.xlane.xlu1 %42 }
 0x12b   :  { %v47_v21 = vmul.f32 0.03125, %v43_v20 }
 0x12d   :  { %v49_v22 = vadd.f32 1e-05, %v47_v21 }
 0x12e   :  { %v46_v23 = vpop.xlane.xlu1 %45 }
 0x12f   :  { %102 = vrsqrt.f32 %v49_v22  ;;  %v48_v24 = vmul.f32 0.03125, %v46_v23 }
 0x131   :  { %v50_v25 = vadd.f32 1e-05, %v48_v24 }
 0x133   :  { %104 = vrsqrt.f32 %v50_v25 }
 0x139   :  { %v103_v26 = vpop.eup %102 }
 0x13a   :  { %v53_v28 = vmul.f32 %v103_v26, %v37_v12 }
 0x13c   :  { %v62_v30 = vmul.f32 %v88_v27, %v53_v28 }
 0x13d   :  { %v105_v31 = vpop.eup %104 }
 0x13e   :  { %v71_v32 = vadd.f32 %v89_v29, %v62_v30  ;;  %v54_v33 = vmul.f32 %v105_v31, %v38_v16 }
 0x140   :  { %v92_v34 = vpack.c.bf16 %v71_v32, %v71_v32  ;;  %v63_v35 = vmul.f32 %v88_v27, %v54_v33 }
 0x142   :  { %82 = vst.msk [vmem:[%s157_s4] sm:$0xf] %vm81_vm1, %v92_v34  ;;  %v72_v36 = vadd.f32 %v89_v29, %v63_v35 }
 0x144   :  { %v93_v37 = vpack.c.bf16 %v72_v36, %v72_v36 }
 0x146   :  { %83 = vst.msk [vmem:[%s157_s4 + $0x4] sm:$0xf] %vm81_vm1, %v93_v37 }

// kernel: transformer_forward.40
= control target key start
LH: loop header
LB: loop body
LE: loop exit
PB: predicated region body
PF: predicated region fallthrough
CT: control target
= control target key end

     0   :  { %s950_s15 = smov 0   ;;  %s1038_s0 = inlined_call_operand.vmem [shape: bf16[2,4,8,8], index: 0, kind: input, shape index: {}]   ;;  %s1039_s1 = inlined_call_operand.vmem [shape: bf16[2,4,8,8], index: 1, kind: input, shape index: {}]   ;;  %s1040_s2 = inlined_call_operand.vmem [shape: bf16[2,4,8,8], index: 2, kind: input, shape index: {}]   ;;  %s1041_s3 = inlined_call_operand.vmem [shape: s32[2,1,8], index: 3, kind: input, shape index: {}]   ;;  %s1042_s4 = inlined_call_operand.vmem [shape: bf16[2,4,8,8], index: 4, kind: output, shape index: {}]  }
   0x1 LB: > { %s796_s16 = sadd.s32 4294967295, %s920_s15   ;;  %p800_p0 = scmp.ge.s32.totalorder %s920_s15, 1  ;;  %s920_s15 = sphi %s950_s15, %s14_s15  }
   0x2   : > { %p190_p1 = scmp.lt.s32.totalorder %s920_s15, 3 }
   0x4   : > { %p191_p2 = pnand %p800_p0, %p190_p1 }
   0x5   : > { %p229_p3 = scmp.lt.s32.totalorder (!%p191_p2), %s796_s16, 1  ;;  %v922_v0 = vmov (!%p191_p2), 0.0   ;;  %vm923_vm0 = vmmov (!%p191_p2), 0   ;;  %vm265_vm1 = vcmask (!%p191_p2), 64512   ;;  %v457_v13 = vlaneseq (!%p191_p2) }
   0x6   : > { %194 = sbr.rel (%p191_p2) target bundleno = 783 (0x30f), region = 36  ;;  %839 = vmatprep.subr.bf16.mxu0 (!%p191_p2), %v922_v0  ;;  %845 = vmatprep.subr.bf16.mxu1 (!%p191_p2), %v922_v0  ;;  %v924_v17 = vmov (!%p191_p2), 0   ;;  %vm517_vm4 = vcmask (!%p191_p2), 1043456   ;;  %vm703_vm5 = vcmask (!%p191_p2), 60416  }
   0x7   : > { %841 = vmatprep.mubr.msk.bf16.mxu0 (!%p191_p2), %vm923_vm0, %v922_v0  ;;  %847 = vmatprep.mubr.msk.bf16.mxu1 (!%p191_p2), %vm923_vm0, %v922_v0  ;;  %v458_v15 = vshrl.u32 (!%p191_p2), %v457_v13, 7 }
   0x9   : > { %v459_v16 = vsub.s32 (!%p191_p2), 0, %v458_v15 }
   0xd   : > { %s1044_s16 = smov (!%p229_p3, %s796_s16), 1 }
   0xe   : > { %s967_s17 = sshll.u32 %s1044_s16, 4  ;;  %s246_s26 = scalar_lea.vmem %s1041_s3, %s1044_s16 }
   0xf   : > { %s238_s20 = scalar_lea.vmem %s1039_s1, %s967_s17  ;;  %s233_s23 = scalar_lea.vmem %s1038_s0, %s967_s17  ;;  %v454_v14 = vld [vmem:[%s246_s26] sm:$0x1] }
  0x10   : > { %v257_v1 = vld [vmem:[%s238_s20] sm:$0xf]  ;;  %v258_v2 = vld [vmem:[%s238_s20 + $0x4] sm:$0xf]  ;;  %v259_v5 = vld [vmem:[%s238_s20 + $0x8] sm:$0xf]  ;;  %s243_s29 = scalar_lea.vmem %s1040_s2, %s967_s17  ;;  %s251_s6 = scalar_lea.vmem %s1042_s4, %s967_s17 }
  0x11   : > { %v270_v3 = vsel %vm265_vm1, %v257_v1, 0  ;;  %v316_v4 = vsel %vm265_vm1, %v258_v2, 0  ;;  %v260_v6 = vld [vmem:[%s238_s20 + $0xc] sm:$0xf]  ;;  %v253_v7 = vld [vmem:[%s233_s23] sm:$0xf] }
  0x12   : > { %840 = vmatpush3.bf16.xpose.msra.mxu0 %v270_v3  ;;  %846 = vmatpush3.bf16.xpose.msra.mxu1 %v316_v4  ;;  %v254_v8 = vld [vmem:[%s233_s23 + $0x4] sm:$0xf]  ;;  %v362_v9 = vsel %vm265_vm1, %v259_v5, 0  ;;  %v408_v10 = vsel %vm265_vm1, %v260_v6, 0  ;;  %v255_v11 = vld [vmem:[%s233_s23 + $0x8] sm:$0xf] }
  0x13   : > { %851 = vmatprep.subr.bf16.mxu0 %v922_v0  ;;  %857 = vmatprep.subr.bf16.mxu1 %v922_v0  ;;  %v256_v12 = vld [vmem:[%s233_s23 + $0xc] sm:$0xf]  ;;  %vm455_vm2 = vcmp.gt.s32.totalorder %v454_v14, 0  ;;  %v261_v5 = vld [vmem:[%s243_s29] sm:$0xf] }
  0x14   : > { %v456_v18 = vsel %vm455_vm2, 1, %v924_v17  ;;  %v519_v6 = vsel %vm517_vm4, %v261_v5, 0 }
  0x15   : > { %v460_v19 = vrot.slane %v456_v18, %v459_v16 }
  0x17   : > { %vm461_vm3 = vcmp.eq.s32.totalorder %v460_v19, 1 }
  0x19   : > { %842 = vmatmul.mubr.msk.bf16.vlgmr.msra.gmra.mrb[0].mxu0 %vm265_vm1, %v253_v7  ;;  %848 = vmatmul.mubr.msk.bf16.vlgmr.msra.gmra.mrb[0].mxu1 %vm265_vm1, %v254_v8  ;;  %v262_v7 = vld [vmem:[%s243_s29 + $0x4] sm:$0xf] }
  0x1a   : > { %852 = vmatpush3.bf16.xpose.msra.mxu0 %v362_v9  ;;  %858 = vmatpush3.bf16.xpose.msra.mxu1 %v408_v10  ;;  %v565_v8 = vsel %vm517_vm4, %v262_v7, 0  ;;  %v263_v9 = vld [vmem:[%s243_s29 + $0x8] sm:$0xf] }
  0x1b   : > { %853 = vmatprep.mubr.msk.bf16.mxu0 %vm923_vm0, %v922_v0  ;;  %859 = vmatprep.mubr.msk.bf16.mxu1 %vm923_vm0, %v922_v0  ;;  %v611_v10 = vsel %vm517_vm4, %v263_v9, 0 }
  0x1c   : > { %863 = vmatprep.subr.bf16.mxu0 %v922_v0  ;;  %869 = vmatprep.subr.bf16.mxu1 %v922_v0 }
  0x21   : > { %854 = vmatmul.mubr.msk.bf16.vlgmr.msra.gmra.mrb[4].mxu0 %vm265_vm1, %v255_v11  ;;  %860 = vmatmul.mubr.msk.bf16.vlgmr.msra.gmra.mrb[4].mxu1 %vm265_vm1, %v256_v12  ;;  %v264_v11 = vld [vmem:[%s243_s29 + $0xc] sm:$0xf] }
  0x22   : > { %865 = vmatprep.mubr.msk.bf16.mxu0 %vm923_vm0, %v922_v0  ;;  %871 = vmatprep.mubr.msk.bf16.mxu1 %vm923_vm0, %v922_v0  ;;  %v657_v12 = vsel %vm517_vm4, %v264_v11, 0 }
  0x23   : > { %864 = vmatpush3.bf16.msra.mxu0 %v519_v6  ;;  %870 = vmatpush3.bf16.msra.mxu1 %v565_v8 }
  0x24   : > { %875 = vmatprep.subr.bf16.mxu0 %v922_v0  ;;  %881 = vmatprep.subr.bf16.mxu1 %v922_v0 }
  0xec   : > { %v306_v20 = vpop.f32.mrb[0].mxu0  ;;  %v352_v21 = vpop.f32.mrb[0].mxu1 }
  0xed   : > { %v450_v22 = vmul.f32 0.35355338, %v306_v20  ;;  %v843_v23 = vpop.f32.mrb[1].mxu0  ;;  %v451_v24 = vmul.f32 0.35355338, %v352_v21  ;;  %v849_v25 = vpop.f32.mrb[1].mxu1 }
  0xee   : > { %v309_v26 = vpop.f32.mrb[2].mxu0  ;;  %v355_v27 = vpop.f32.mrb[2].mxu1 }
  0xef   : > { %v844_v28 = vpop.f32.mrb[3].mxu0  ;;  %v850_v29 = vpop.f32.mrb[3].mxu1  ;;  %v462_v30 = vsel %vm461_vm3, %v450_v22, -1e+09  ;;  %v463_v31 = vsel %vm461_vm3, %v451_v24, -1e+09 }
  0xf0   : > { %v466_v32 = vsel %vm265_vm1, %v462_v30, -inf  ;;  %v469_v33 = vsel %vm265_vm1, %v463_v31, -inf }
  0xf1   : > { %467 = vmax.xlane.f32.xlu0 %v466_v32 }
  0xf4   : > { %v398_v34 = vpop.f32.mrb[4].mxu0  ;;  %v444_v35 = vpop.f32.mrb[4].mxu1 }
  0xf5   : > { %v452_v36 = vmul.f32 0.35355338, %v398_v34  ;;  %470 = vmax.xlane.f32.xlu0 %v469_v33  ;;  %v855_v37 = vpop.f32.mrb[5].mxu0  ;;  %v453_v38 = vmul.f32 0.35355338, %v444_v35  ;;  %v861_v39 = vpop.f32.mrb[5].mxu1 }
  0xf6   : > { %v401_v40 = vpop.f32.mrb[6].mxu0  ;;  %v447_v41 = vpop.f32.mrb[6].mxu1 }
  0xf7   : > { %v856_v42 = vpop.f32.mrb[7].mxu0  ;;  %v862_v43 = vpop.f32.mrb[7].mxu1  ;;  %v464_v44 = vsel %vm461_vm3, %v452_v36, -1e+09  ;;  %v465_v45 = vsel %vm461_vm3, %v453_v38, -1e+09 }
  0xf8   : > { %v472_v46 = vsel %vm265_vm1, %v464_v44, -inf  ;;  %v475_v47 = vsel %vm265_vm1, %v465_v45, -inf }
  0xf9   : > { %473 = vmax.xlane.f32.xlu1 %v472_v46 }
  0xfd   : > { %476 = vmax.xlane.f32.xlu1 %v475_v47 }
 0x17e   : > { %v468_v48 = vpop.xlane.xlu0 %467 }
 0x17f   : > { %v478_v49 = vsub.f32 %v462_v30, %v468_v48 }
 0x181   : > { %v482_v50 = vmul.f32 1.442695, %v478_v49 }
 0x182   : > { %v471_v51 = vpop.xlane.xlu0 %470 }
 0x183   : > { %898 = vpow2.f32 %v482_v50  ;;  %v479_v52 = vsub.f32 %v463_v31, %v471_v51 }
 0x185   : > { %v484_v53 = vmul.f32 1.442695, %v479_v52 }
 0x186   : > { %v474_v54 = vpop.xlane.xlu1 %473 }
 0x187   : > { %900 = vpow2.f32 %v484_v53  ;;  %v480_v55 = vsub.f32 %v464_v44, %v474_v54 }
 0x189   : > { %v486_v56 = vmul.f32 1.442695, %v480_v55 }
 0x18a   : > { %v477_v57 = vpop.xlane.xlu1 %476 }
 0x18b   : > { %902 = vpow2.f32 %v486_v56  ;;  %v481_v58 = vsub.f32 %v465_v45, %v477_v57 }
 0x18d   : > { %v899_v59 = vpop.eup %898  ;;  %v488_v60 = vmul.f32 1.442695, %v481_v58 }
 0x18e   : > { %v490_v61 = vsel %vm265_vm1, %v899_v59, 0.0 }
 0x18f   : > { %904 = vpow2.f32 %v488_v60  ;;  %491 = vadd.xlane.f32.xlu0 %v490_v61 }
 0x191   : > { %v901_v62 = vpop.eup %900 }
 0x192   : > { %v493_v63 = vsel %vm265_vm1, %v901_v62, 0.0 }
 0x193   : > { %494 = vadd.xlane.f32.xlu1 %v493_v63 }
 0x195   : > { %v903_v1 = vpop.eup %902 }
 0x196   : > { %v496_v2 = vsel %vm265_vm1, %v903_v1, 0.0 }
 0x197   : > { %497 = vadd.xlane.f32.xlu0 %v496_v2 }
 0x199   : > { %v905_v3 = vpop.eup %904 }
 0x19a   : > { %v499_v4 = vsel %vm265_vm1, %v905_v3, 0.0 }
 0x19b   : > { %500 = vadd.xlane.f32.xlu1 %v499_v4 }
 0x21c   : > { %v492_v13 = vpop.xlane.xlu0 %491 }
 0x21d   : > { %906 = vrcp.f32 %v492_v13 }
 0x220   : > { %v495_v14 = vpop.xlane.xlu1 %494 }
 0x221   : > { %908 = vrcp.f32 %v495_v14 }
 0x224   : > { %v498_v15 = vpop.xlane.xlu0 %497 }
 0x225   : > { %910 = vrcp.f32 %v498_v15 }
 0x227   : > { %v907_v16 = vpop.eup %906 }
 0x228   : > { %v506_v17 = vmul.f32 %v907_v16, %v899_v59  ;;  %v501_v18 = vpop.xlane.xlu1 %500 }
 0x229   : > { %912 = vrcp.f32 %v501_v18 }
 0x22a   : > { %v510_v19 = vpack.c.bf16 %v506_v17, %v506_v17 }
 0x22b   : > { %v909_v20 = vpop.eup %908 }
 0x22c   : > { %v507_v21 = vmul.f32 %v909_v20, %v901_v62  ;;  %866 = vmatmul.mubr.msk.bf16.vlgmr.msra.gmra.mrb[8].mxu0 %vm265_vm1, %v510_v19 }
 0x22d   : > { %876 = vmatpush3.bf16.msra.mxu0 %v611_v10  ;;  %877 = vmatprep.mubr.msk.bf16.mxu0 %vm923_vm0, %v922_v0 }
 0x22e   : > { %v511_v22 = vpack.c.bf16 %v507_v21, %v507_v21 }
 0x22f   : > { %v911_v23 = vpop.eup %910 }
 0x230   : > { %v508_v24 = vmul.f32 %v911_v23, %v903_v1  ;;  %872 = vmatmul.mubr.msk.bf16.vlgmr.msra.gmra.mrb[8].mxu1 %vm265_vm1, %v511_v22 }
 0x231   : > { %882 = vmatpush3.bf16.msra.mxu1 %v657_v12  ;;  %883 = vmatprep.mubr.msk.bf16.mxu1 %vm923_vm0, %v922_v0 }
 0x232   : > { %v512_v25 = vpack.c.bf16 %v508_v24, %v508_v24 }
 0x233   : > { %v913_v26 = vpop.eup %912 }
 0x234   : > { %v509_v27 = vmul.f32 %v913_v26, %v905_v3  ;;  %878 = vmatmul.mubr.msk.bf16.vlgmr.msra.gmra.mrb[12].mxu0 %vm265_vm1, %v512_v25 }
 0x236   : > { %v513_v28 = vpack.c.bf16 %v509_v27, %v509_v27 }
 0x238   : > { %884 = vmatmul.mubr.msk.bf16.vlgmr.msra.gmra.mrb[12].mxu1 %vm265_vm1, %v513_v28 }
 0x2ff   : > { %v555_v29 = vpop.f32.mrb[8].mxu0 }
 0x300   : > { %v699_v30 = vpack.c.bf16 %v555_v29, %v555_v29  ;;  %v867_v31 = vpop.f32.mrb[9].mxu0 }
 0x301   : > { %v558_v32 = vpop.f32.mrb[10].mxu0 }
 0x302   : > { %704 = vst.msk [vmem:[%s251_s6] sm:$0xf] %vm703_vm5, %v699_v30  ;;  %v868_v0 = vpop.f32.mrb[11].mxu0 }
 0x303   : > { %v601_v33 = vpop.f32.mrb[8].mxu1 }
 0x304   : > { %v700_v34 = vpack.c.bf16 %v601_v33, %v601_v33  ;;  %v873_v35 = vpop.f32.mrb[9].mxu1 }
 0x305   : > { %v604_v36 = vpop.f32.mrb[10].mxu1 }
 0x306   : > { %705 = vst.msk [vmem:[%s251_s6 + $0x4] sm:$0xf] %vm703_vm5, %v700_v34  ;;  %v874_v37 = vpop.f32.mrb[11].mxu1 }
 0x307   : > { %v647_v38 = vpop.f32.mrb[12].mxu0 }
 0x308   : > { %v701_v39 = vpack.c.bf16 %v647_v38, %v647_v38  ;;  %v879_v40 = vpop.f32.mrb[13].mxu0 }
 0x309   : > { %v650_v41 = vpop.f32.mrb[14].mxu0 }
 0x30a   : > { %706 = vst.msk [vmem:[%s251_s6 + $0x8] sm:$0xf] %vm703_vm5, %v701_v39  ;;  %v880_v42 = vpop.f32.mrb[15].mxu0 }
 0x30b   : > { %v693_v43 = vpop.f32.mrb[12].mxu1 }
 0x30c   : > { %v702_v44 = vpack.c.bf16 %v693_v43, %v693_v43  ;;  %v885_v45 = vpop.f32.mrb[13].mxu1 }
 0x30d   : > { %v696_v46 = vpop.f32.mrb[14].mxu1 }
 0x30e   : > { %707 = vst.msk [vmem:[%s251_s6 + $0xc] sm:$0xf] %vm703_vm5, %v702_v44  ;;  %v886_v47 = vpop.f32.mrb[15].mxu1 }
 0x30f PF: > { %s14_s15 = sadd.s32 1, %s920_s15  }
 0x310   : > { %p11_p4 = scmp.ge.s32.totalorder %s14_s15, 4  }
 0x312   :  { %13 = sbr.rel (!%p11_p4) target bundleno = 1 (0x1), region = 75 }

// kernel: transformer_forward.54
= control target key start
LH: loop header
LB: loop body
LE: loop exit
PB: predicated region body
PF: predicated region fallthrough
CT: control target
= control target key end

     0   :  { %s958_s15 = smov 0   ;;  %s1054_s0 = inlined_call_operand.vmem [shape: bf16[2,4,8,8], index: 0, kind: input, shape index: {}]   ;;  %s1055_s1 = inlined_call_operand.vmem [shape: bf16[2,4,8,8], index: 1, kind: input, shape index: {}]   ;;  %s1056_s2 = inlined_call_operand.vmem [shape: bf16[2,4,8,8], index: 2, kind: input, shape index: {}]   ;;  %s1057_s3 = inlined_call_operand.vmem [shape: s32[2,1,8], index: 3, kind: input, shape index: {}]   ;;  %s1058_s4 = inlined_call_operand.vmem [shape: bf16[2,4,8,8], index: 4, kind: output, shape index: {}]  }
   0x1 LB: > { %s804_s16 = sadd.s32 4294967295, %s928_s15   ;;  %p808_p0 = scmp.ge.s32.totalorder %s928_s15, 1  ;;  %s928_s15 = sphi %s958_s15, %s14_s15  }
   0x2   : > { %p190_p1 = scmp.lt.s32.totalorder %s928_s15, 3 }
   0x4   : > { %p191_p2 = pnand %p808_p0, %p190_p1 }
   0x5   : > { %p229_p3 = scmp.lt.s32.totalorder (!%p191_p2), %s804_s16, 1  ;;  %v930_v0 = vmov (!%p191_p2), 0.0   ;;  %vm931_vm0 = vmmov (!%p191_p2), 0   ;;  %vm265_vm1 = vcmask (!%p191_p2), 64512   ;;  %v456_v13 = vlaneseq (!%p191_p2) }
   0x6   : > { %194 = sbr.rel (%p191_p2) target bundleno = 783 (0x30f), region = 36  ;;  %847 = vmatprep.subr.bf16.mxu0 (!%p191_p2), %v930_v0  ;;  %853 = vmatprep.subr.bf16.mxu1 (!%p191_p2), %v930_v0  ;;  %v932_v17 = vmov (!%p191_p2), 0   ;;  %vm525_vm6 = vcmask (!%p191_p2), 1043456   ;;  %vm711_vm7 = vcmask (!%p191_p2), 60416  }
   0x7   : > { %849 = vmatprep.mubr.msk.bf16.mxu0 (!%p191_p2), %vm931_vm0, %v930_v0  ;;  %855 = vmatprep.mubr.msk.bf16.mxu1 (!%p191_p2), %vm931_vm0, %v930_v0  ;;  %v457_v15 = vshrl.u32 (!%p191_p2), %v456_v13, 7  ;;  %v459_v19 = vand.u32 (!%p191_p2), 127, %v456_v13 }
   0x9   : > { %v464_v16 = vsub.s32 (!%p191_p2), 0, %v457_v15  ;;  %vm460_vm3 = vcmp.le.s32.totalorder (!%p191_p2), %v459_v19, %v457_v15 }
   0xd   : > { %s1062_s16 = smov (!%p229_p3, %s804_s16), 1 }
   0xe   : > { %s975_s17 = sshll.u32 %s1062_s16, 4  ;;  %s246_s26 = scalar_lea.vmem %s1057_s3, %s1062_s16 }
   0xf   : > { %s238_s20 = scalar_lea.vmem %s1055_s1, %s975_s17  ;;  %s233_s23 = scalar_lea.vmem %s1054_s0, %s975_s17  ;;  %v454_v14 = vld [vmem:[%s246_s26] sm:$0x1] }
  0x10   : > { %v257_v1 = vld [vmem:[%s238_s20] sm:$0xf]  ;;  %v258_v2 = vld [vmem:[%s238_s20 + $0x4] sm:$0xf]  ;;  %v259_v5 = vld [vmem:[%s238_s20 + $0x8] sm:$0xf]  ;;  %s243_s29 = scalar_lea.vmem %s1056_s2, %s975_s17  ;;  %s251_s6 = scalar_lea.vmem %s1058_s4, %s975_s17 }
  0x11   : > { %v270_v3 = vsel %vm265_vm1, %v257_v1, 0  ;;  %v316_v4 = vsel %vm265_vm1, %v258_v2, 0  ;;  %v260_v6 = vld [vmem:[%s238_s20 + $0xc] sm:$0xf]  ;;  %v253_v7 = vld [vmem:[%s233_s23] sm:$0xf] }
  0x12   : > { %848 = vmatpush3.bf16.xpose.msra.mxu0 %v270_v3  ;;  %854 = vmatpush3.bf16.xpose.msra.mxu1 %v316_v4  ;;  %v254_v8 = vld [vmem:[%s233_s23 + $0x4] sm:$0xf]  ;;  %v362_v9 = vsel %vm265_vm1, %v259_v5, 0  ;;  %v408_v10 = vsel %vm265_vm1, %v260_v6, 0  ;;  %v255_v11 = vld [vmem:[%s233_s23 + $0x8] sm:$0xf] }
  0x13   : > { %859 = vmatprep.subr.bf16.mxu0 %v930_v0  ;;  %865 = vmatprep.subr.bf16.mxu1 %v930_v0  ;;  %v256_v12 = vld [vmem:[%s233_s23 + $0xc] sm:$0xf]  ;;  %vm455_vm2 = vcmp.gt.s32.totalorder %v454_v14, 0 }
  0x14   : > { %v461_v18 = vsel %vm455_vm2, 1, %v932_v17  ;;  %v264_v13 = vld [vmem:[%s243_s29 + $0xc] sm:$0xf] }
  0x15   : > { %v465_v20 = vrot.slane %v461_v18, %v464_v16  ;;  %v665_v14 = vsel %vm525_vm6, %v264_v13, 0 }
  0x17   : > { %vm466_vm4 = vcmp.eq.s32.totalorder %v465_v20, 1 }
  0x18   : > { %vm1009_vm5 = vmand %vm466_vm4, %vm460_vm3 }
  0x19   : > { %850 = vmatmul.mubr.msk.bf16.vlgmr.msra.gmra.mrb[0].mxu0 %vm265_vm1, %v253_v7  ;;  %856 = vmatmul.mubr.msk.bf16.vlgmr.msra.gmra.mrb[0].mxu1 %vm265_vm1, %v254_v8  ;;  %v261_v7 = vld [vmem:[%s243_s29] sm:$0xf] }
  0x1a   : > { %860 = vmatpush3.bf16.xpose.msra.mxu0 %v362_v9  ;;  %866 = vmatpush3.bf16.xpose.msra.mxu1 %v408_v10  ;;  %v527_v8 = vsel %vm525_vm6, %v261_v7, 0  ;;  %v262_v9 = vld [vmem:[%s243_s29 + $0x4] sm:$0xf] }
  0x1b   : > { %861 = vmatprep.mubr.msk.bf16.mxu0 %vm931_vm0, %v930_v0  ;;  %867 = vmatprep.mubr.msk.bf16.mxu1 %vm931_vm0, %v930_v0  ;;  %v573_v10 = vsel %vm525_vm6, %v262_v9, 0 }
  0x1c   : > { %871 = vmatprep.subr.bf16.mxu0 %v930_v0  ;;  %877 = vmatprep.subr.bf16.mxu1 %v930_v0 }
  0x21   : > { %862 = vmatmul.mubr.msk.bf16.vlgmr.msra.gmra.mrb[4].mxu0 %vm265_vm1, %v255_v11  ;;  %868 = vmatmul.mubr.msk.bf16.vlgmr.msra.gmra.mrb[4].mxu1 %vm265_vm1, %v256_v12  ;;  %v263_v11 = vld [vmem:[%s243_s29 + $0x8] sm:$0xf] }
  0x22   : > { %873 = vmatprep.mubr.msk.bf16.mxu0 %vm931_vm0, %v930_v0  ;;  %879 = vmatprep.mubr.msk.bf16.mxu1 %vm931_vm0, %v930_v0  ;;  %v619_v12 = vsel %vm525_vm6, %v263_v11, 0 }
  0x23   : > { %872 = vmatpush3.bf16.msra.mxu0 %v527_v8  ;;  %878 = vmatpush3.bf16.msra.mxu1 %v573_v10 }
  0x24   : > { %883 = vmatprep.subr.bf16.mxu0 %v930_v0  ;;  %889 = vmatprep.subr.bf16.mxu1 %v930_v0 }
  0xec   : > { %v306_v21 = vpop.f32.mrb[0].mxu0  ;;  %v352_v22 = vpop.f32.mrb[0].mxu1 }
  0xed   : > { %v450_v24 = vmul.f32 0.35355338, %v306_v21  ;;  %v851_v25 = vpop.f32.mrb[1].mxu0  ;;  %v451_v26 = vmul.f32 0.35355338, %v352_v22  ;;  %v857_v27 = vpop.f32.mrb[1].mxu1 }
  0xee   : > { %v309_v28 = vpop.f32.mrb[2].mxu0  ;;  %v355_v29 = vpop.f32.mrb[2].mxu1 }
  0xef   : > { %v852_v30 = vpop.f32.mrb[3].mxu0  ;;  %v858_v31 = vpop.f32.mrb[3].mxu1  ;;  %v470_v32 = vsel %vm1009_vm5, %v450_v24, -1e+09  ;;  %v471_v33 = vsel %vm1009_vm5, %v451_v26, -1e+09 }
  0xf0   : > { %v474_v34 = vsel %vm265_vm1, %v470_v32, -inf  ;;  %v477_v35 = vsel %vm265_vm1, %v471_v33, -inf }
  0xf1   : > { %475 = vmax.xlane.f32.xlu0 %v474_v34 }
  0xf4   : > { %v398_v36 = vpop.f32.mrb[4].mxu0  ;;  %v444_v37 = vpop.f32.mrb[4].mxu1 }
  0xf5   : > { %v452_v38 = vmul.f32 0.35355338, %v398_v36  ;;  %478 = vmax.xlane.f32.xlu0 %v477_v35  ;;  %v863_v39 = vpop.f32.mrb[5].mxu0  ;;  %v453_v40 = vmul.f32 0.35355338, %v444_v37  ;;  %v869_v41 = vpop.f32.mrb[5].mxu1 }
  0xf6   : > { %v401_v42 = vpop.f32.mrb[6].mxu0  ;;  %v447_v43 = vpop.f32.mrb[6].mxu1 }
  0xf7   : > { %v864_v44 = vpop.f32.mrb[7].mxu0  ;;  %v870_v45 = vpop.f32.mrb[7].mxu1  ;;  %v472_v46 = vsel %vm1009_vm5, %v452_v38, -1e+09  ;;  %v473_v47 = vsel %vm1009_vm5, %v453_v40, -1e+09 }
  0xf8   : > { %v480_v48 = vsel %vm265_vm1, %v472_v46, -inf  ;;  %v483_v49 = vsel %vm265_vm1, %v473_v47, -inf }
  0xf9   : > { %481 = vmax.xlane.f32.xlu1 %v480_v48 }
  0xfd   : > { %484 = vmax.xlane.f32.xlu1 %v483_v49 }
 0x17e   : > { %v476_v50 = vpop.xlane.xlu0 %475 }
 0x17f   : > { %v486_v51 = vsub.f32 %v470_v32, %v476_v50 }
 0x181   : > { %v490_v52 = vmul.f32 1.442695, %v486_v51 }
 0x182   : > { %v479_v53 = vpop.xlane.xlu0 %478 }
 0x183   : > { %906 = vpow2.f32 %v490_v52  ;;  %v487_v54 = vsub.f32 %v471_v33, %v479_v53 }
 0x185   : > { %v492_v55 = vmul.f32 1.442695, %v487_v54 }
 0x186   : > { %v482_v56 = vpop.xlane.xlu1 %481 }
 0x187   : > { %908 = vpow2.f32 %v492_v55  ;;  %v488_v57 = vsub.f32 %v472_v46, %v482_v56 }
 0x189   : > { %v494_v58 = vmul.f32 1.442695, %v488_v57 }
 0x18a   : > { %v485_v59 = vpop.xlane.xlu1 %484 }
 0x18b   : > { %910 = vpow2.f32 %v494_v58  ;;  %v489_v60 = vsub.f32 %v473_v47, %v485_v59 }
 0x18d   : > { %v907_v61 = vpop.eup %906  ;;  %v496_v62 = vmul.f32 1.442695, %v489_v60 }
 0x18e   : > { %v498_v63 = vsel %vm265_vm1, %v907_v61, 0.0 }
 0x18f   : > { %912 = vpow2.f32 %v496_v62  ;;  %499 = vadd.xlane.f32.xlu0 %v498_v63 }
 0x191   : > { %v909_v1 = vpop.eup %908 }
 0x192   : > { %v501_v2 = vsel %vm265_vm1, %v909_v1, 0.0 }
 0x193   : > { %502 = vadd.xlane.f32.xlu1 %v501_v2 }
 0x195   : > { %v911_v3 = vpop.eup %910 }
 0x196   : > { %v504_v4 = vsel %vm265_vm1, %v911_v3, 0.0 }
 0x197   : > { %505 = vadd.xlane.f32.xlu0 %v504_v4 }
 0x199   : > { %v913_v5 = vpop.eup %912 }
 0x19a   : > { %v507_v6 = vsel %vm265_vm1, %v913_v5, 0.0 }
 0x19b   : > { %508 = vadd.xlane.f32.xlu1 %v507_v6 }
 0x21c   : > { %v500_v15 = vpop.xlane.xlu0 %499 }
 0x21d   : > { %914 = vrcp.f32 %v500_v15 }
 0x220   : > { %v503_v16 = vpop.xlane.xlu1 %502 }
 0x221   : > { %916 = vrcp.f32 %v503_v16 }
 0x224   : > { %v506_v17 = vpop.xlane.xlu0 %505 }
 0x225   : > { %918 = vrcp.f32 %v506_v17 }
 0x227   : > { %v915_v18 = vpop.eup %914 }
 0x228   : > { %v514_v19 = vmul.f32 %v915_v18, %v907_v61  ;;  %v509_v20 = vpop.xlane.xlu1 %508 }
 0x229   : > { %920 = vrcp.f32 %v509_v20 }
 0x22a   : > { %v518_v21 = vpack.c.bf16 %v514_v19, %v514_v19 }
 0x22b   : > { %v917_v22 = vpop.eup %916 }
 0x22c   : > { %v515_v23 = vmul.f32 %v917_v22, %v909_v1  ;;  %874 = vmatmul.mubr.msk.bf16.vlgmr.msra.gmra.mrb[8].mxu0 %vm265_vm1, %v518_v21 }
 0x22d   : > { %884 = vmatpush3.bf16.msra.mxu0 %v619_v12  ;;  %885 = vmatprep.mubr.msk.bf16.mxu0 %vm931_vm0, %v930_v0 }
 0x22e   : > { %v519_v24 = vpack.c.bf16 %v515_v23, %v515_v23 }
 0x22f   : > { %v919_v25 = vpop.eup %918 }
 0x230   : > { %v516_v26 = vmul.f32 %v919_v25, %v911_v3  ;;  %880 = vmatmul.mubr.msk.bf16.vlgmr.msra.gmra.mrb[8].mxu1 %vm265_vm1, %v519_v24 }
 0x231   : > { %890 = vmatpush3.bf16.msra.mxu1 %v665_v14  ;;  %891 = vmatprep.mubr.msk.bf16.mxu1 %vm931_vm0, %v930_v0 }
 0x232   : > { %v520_v27 = vpack.c.bf16 %v516_v26, %v516_v26 }
 0x233   : > { %v921_v28 = vpop.eup %920 }
 0x234   : > { %v517_v29 = vmul.f32 %v921_v28, %v913_v5  ;;  %886 = vmatmul.mubr.msk.bf16.vlgmr.msra.gmra.mrb[12].mxu0 %vm265_vm1, %v520_v27 }
 0x236   : > { %v521_v30 = vpack.c.bf16 %v517_v29, %v517_v29 }
 0x238   : > { %892 = vmatmul.mubr.msk.bf16.vlgmr.msra.gmra.mrb[12].mxu1 %vm265_vm1, %v521_v30 }
 0x2ff   : > { %v563_v31 = vpop.f32.mrb[8].mxu0 }
 0x300   : > { %v707_v32 = vpack.c.bf16 %v563_v31, %v563_v31  ;;  %v875_v33 = vpop.f32.mrb[9].mxu0 }
 0x301   : > { %v566_v34 = vpop.f32.mrb[10].mxu0 }
 0x302   : > { %712 = vst.msk [vmem:[%s251_s6] sm:$0xf] %vm711_vm7, %v707_v32  ;;  %v876_v0 = vpop.f32.mrb[11].mxu0 }
 0x303   : > { %v609_v35 = vpop.f32.mrb[8].mxu1 }
 0x304   : > { %v708_v36 = vpack.c.bf16 %v609_v35, %v609_v35  ;;  %v881_v37 = vpop.f32.mrb[9].mxu1 }
 0x305   : > { %v612_v38 = vpop.f32.mrb[10].mxu1 }
 0x306   : > { %713 = vst.msk [vmem:[%s251_s6 + $0x4] sm:$0xf] %vm711_vm7, %v708_v36  ;;  %v882_v39 = vpop.f32.mrb[11].mxu1 }
 0x307   : > { %v655_v40 = vpop.f32.mrb[12].mxu0 }
 0x308   : > { %v709_v41 = vpack.c.bf16 %v655_v40, %v655_v40  ;;  %v887_v42 = vpop.f32.mrb[13].mxu0 }
 0x309   : > { %v658_v43 = vpop.f32.mrb[14].mxu0 }
 0x30a   : > { %714 = vst.msk [vmem:[%s251_s6 + $0x8] sm:$0xf] %vm711_vm7, %v709_v41  ;;  %v888_v44 = vpop.f32.mrb[15].mxu0 }
 0x30b   : > { %v701_v45 = vpop.f32.mrb[12].mxu1 }
 0x30c   : > { %v710_v46 = vpack.c.bf16 %v701_v45, %v701_v45  ;;  %v893_v47 = vpop.f32.mrb[13].mxu1 }
 0x30d   : > { %v704_v48 = vpop.f32.mrb[14].mxu1 }
 0x30e   : > { %715 = vst.msk [vmem:[%s251_s6 + $0xc] sm:$0xf] %vm711_vm7, %v710_v46  ;;  %v894_v49 = vpop.f32.mrb[15].mxu1 }
 0x30f PF: > { %s14_s15 = sadd.s32 1, %s928_s15  }
 0x310   : > { %p11_p4 = scmp.ge.s32.totalorder %s14_s15, 4  }
 0x312   :  { %13 = sbr.rel (!%p11_p4) target bundleno = 1 (0x1), region = 75 }

// kernel: transformer_forward.43
= control target key start
LH: loop header
LB: loop body
LE: loop exit
PB: predicated region body
PF: predicated region fallthrough
CT: control target
= control target key end

     0   :  { %v229_v0 = vmov 0.0   ;;  %vm230_vm0 = vmmov 0   ;;  %s284_s1 = inlined_call_operand.vmem [shape: bf16[128,128], index: 1, kind: input, shape index: {}]   ;;  %s285_s0 = inlined_call_operand.vmem [shape: bf16[16,128], index: 0, kind: input, shape index: {}]   ;;  %s286_s2 = inlined_call_operand.vmem [shape: f32[1,128], index: 2, kind: input, shape index: {}]   ;;  %s287_s3 = inlined_call_operand.vmem [shape: bf16[16,128], index: 3, kind: output, shape index: {}]  }
   0x1   :  { %198 = vmatprep.subr.bf16.mxu0 %v229_v0  ;;  %v220_v1 = vld [vmem:[%s284_s1] sm:$0xff]   ;;  %214 = vmatprep.mubr.msk.bf16.mxu0 %vm230_vm0, %v229_v0  ;;  %v221_v2 = vld [vmem:[%s284_s1 + $0x8] sm:$0xff]   ;;  %v222_v3 = vld [vmem:[%s284_s1 + $0x10] sm:$0xff]  }
   0x2   :  { %199 = vmatpush3.bf16.msra.mxu0 %v220_v1  ;;  %v223_v4 = vld [vmem:[%s284_s1 + $0x18] sm:$0xff]   ;;  %v224_v5 = vld [vmem:[%s284_s1 + $0x20] sm:$0xff]   ;;  %v225_v6 = vld [vmem:[%s284_s1 + $0x28] sm:$0xff]  }
   0x3   :  { %200 = vmatprep.subr.bf16.mxu0 %v229_v0  ;;  %v226_v7 = vld [vmem:[%s284_s1 + $0x30] sm:$0xff]   ;;  %v227_v8 = vld [vmem:[%s284_s1 + $0x38] sm:$0xff]   ;;  %v228_v9 = vld [vmem:[%s285_s0] sm:$0xff]  }
   0x4   :  { %v179_v10 = vld [vmem:[%s286_s2] ss:$0 sm:$0xff] }
   0x6   :  { %201 = vmatpush3.bf16.msra.mxu0 %v221_v2 }
   0x7   :  { %202 = vmatprep.subr.bf16.mxu0 %v229_v0 }
   0xa   :  { %203 = vmatpush3.bf16.msra.mxu0 %v222_v3 }
   0xb   :  { %204 = vmatprep.subr.bf16.mxu0 %v229_v0 }
   0xe   :  { %205 = vmatpush3.bf16.msra.mxu0 %v223_v4 }
   0xf   :  { %206 = vmatprep.subr.bf16.mxu0 %v229_v0 }
  0x12   :  { %207 = vmatpush3.bf16.msra.mxu0 %v224_v5 }
  0x13   :  { %208 = vmatprep.subr.bf16.mxu0 %v229_v0 }
  0x16   :  { %209 = vmatpush3.bf16.msra.mxu0 %v225_v6 }
  0x17   :  { %210 = vmatprep.subr.bf16.mxu0 %v229_v0 }
  0x1a   :  { %211 = vmatpush3.bf16.msra.mxu0 %v226_v7 }
  0x1b   :  { %212 = vmatprep.subr.bf16.mxu0 %v229_v0 }
  0x1e   :  { %213 = vmatpush3.bf16.msra.mxu0 %v227_v8 }
  0x21   :  { %215 = vmatmul.mubr.bf16.vlgmr.msra.gmra.mrb[0].mxu0 %v228_v9 }
  0xf4   :  { %v129_v11 = vpop.f32.mrb[0].mxu0 }
  0xf5   :  { %v152_v12 = vadd.f32 %v179_v10, %v129_v11  ;;  %v216_v13 = vpop.f32.mrb[1].mxu0 }
  0xf6   :  { %v132_v14 = vpop.f32.mrb[2].mxu0 }
  0xf7   :  { %v153_v15 = vadd.f32 %v179_v10, %v132_v14  ;;  %v217_v16 = vpop.f32.mrb[3].mxu0  ;;  %v154_v17 = vmax.f32 %v152_v12, 0.0 }
  0xf9   :  { %v155_v18 = vmax.f32 %v153_v15, 0.0 }
  0xfb   :  { %v187_v19 = vpack.c.bf16 %v155_v18, %v154_v17 }
  0xfd   :  { %188 = vst [vmem:[%s287_s3] sm:$0xff] %v187_v19  }

// kernel: transformer_forward.77
= control target key start
LH: loop header
LB: loop body
LE: loop exit
PB: predicated region body
PF: predicated region fallthrough
CT: control target
= control target key end

     0   :  { %v210_v0 = vmov 0.0   ;;  %vm211_vm0 = vmmov 0   ;;  %s268_s1 = inlined_call_operand.vmem [shape: bf16[128,128], index: 1, kind: input, shape index: {}]   ;;  %s269_s0 = inlined_call_operand.vmem [shape: bf16[16,128], index: 0, kind: input, shape index: {}]   ;;  %s270_s2 = inlined_call_operand.vmem [shape: f32[1,128], index: 2, kind: input, shape index: {}]   ;;  %s271_s3 = inlined_call_operand.vmem [shape: f32[16,128], index: 3, kind: output, shape index: {}]  }
   0x1   :  { %179 = vmatprep.subr.bf16.mxu0 %v210_v0  ;;  %v201_v1 = vld [vmem:[%s268_s1] sm:$0xff]   ;;  %195 = vmatprep.mubr.msk.bf16.mxu0 %vm211_vm0, %v210_v0  ;;  %v202_v2 = vld [vmem:[%s268_s1 + $0x8] sm:$0xff]   ;;  %v203_v3 = vld [vmem:[%s268_s1 + $0x10] sm:$0xff]  }
   0x2   :  { %180 = vmatpush3.bf16.msra.mxu0 %v201_v1  ;;  %v204_v4 = vld [vmem:[%s268_s1 + $0x18] sm:$0xff]   ;;  %v205_v5 = vld [vmem:[%s268_s1 + $0x20] sm:$0xff]   ;;  %v206_v6 = vld [vmem:[%s268_s1 + $0x28] sm:$0xff]  }
   0x3   :  { %181 = vmatprep.subr.bf16.mxu0 %v210_v0  ;;  %v207_v7 = vld [vmem:[%s268_s1 + $0x30] sm:$0xff]   ;;  %v208_v8 = vld [vmem:[%s268_s1 + $0x38] sm:$0xff]   ;;  %v209_v9 = vld [vmem:[%s269_s0] sm:$0xff]  }
   0x4   :  { %v169_v10 = vld [vmem:[%s270_s2] ss:$0 sm:$0xff] }
   0x6   :  { %182 = vmatpush3.bf16.msra.mxu0 %v202_v2 }
   0x7   :  { %183 = vmatprep.subr.bf16.mxu0 %v210_v0 }
   0xa   :  { %184 = vmatpush3.bf16.msra.mxu0 %v203_v3 }
   0xb   :  { %185 = vmatprep.subr.bf16.mxu0 %v210_v0 }
   0xe   :  { %186 = vmatpush3.bf16.msra.mxu0 %v204_v4 }
   0xf   :  { %187 = vmatprep.subr.bf16.mxu0 %v210_v0 }
  0x12   :  { %188 = vmatpush3.bf16.msra.mxu0 %v205_v5 }
  0x13   :  { %189 = vmatprep.subr.bf16.mxu0 %v210_v0 }
  0x16   :  { %190 = vmatpush3.bf16.msra.mxu0 %v206_v6 }
  0x17   :  { %191 = vmatprep.subr.bf16.mxu0 %v210_v0 }
  0x1a   :  { %192 = vmatpush3.bf16.msra.mxu0 %v207_v7 }
  0x1b   :  { %193 = vmatprep.subr.bf16.mxu0 %v210_v0 }
  0x1e   :  { %194 = vmatpush3.bf16.msra.mxu0 %v208_v8 }
  0x21   :  { %196 = vmatmul.mubr.bf16.vlgmr.msra.gmra.mrb[0].mxu0 %v209_v9 }
  0xf4   :  { %v129_v11 = vpop.f32.mrb[0].mxu0 }
  0xf5   :  { %v152_v12 = vadd.f32 %v169_v10, %v129_v11  ;;  %v197_v13 = vpop.f32.mrb[1].mxu0 }
  0xf6   :  { %v132_v14 = vpop.f32.mrb[2].mxu0 }
  0xf7   :  { %154 = vst [vmem:[%s271_s3] sm:$0xff] %v152_v12  ;;  %v153_v15 = vadd.f32 %v169_v10, %v132_v14  ;;  %v198_v16 = vpop.f32.mrb[3].mxu0 }
  0xf9   :  { %155 = vst [vmem:[%s271_s3 + $0x8] sm:$0xff] %v153_v15 }

</bundles_post_ra>
